<compile_context>
chip_gen: v5e
topology: v5e:2x2
jax: 0.10.0
libtpu: 0.0.40
codegen_flags: <defaults>
</compile_context>

<pallas_src>
import jax
import jax.numpy as jnp
from jax.experimental import pallas as pl
from jax.experimental.pallas import tpu as pltpu


# -------------------------------------------------------------------------
# Pallas kernel
# -------------------------------------------------------------------------
def seq_decoder_kernel(
    # batch-tiled data
    emb_ref,        # [TB, E]
    hid_ref,        # [TB, H]
    enc_ref,        # [S, TB, 2He]   seq-major (no wrapper transpose)
    bias_ref,       # [S, TB, 1]     additive attention-mask bias
    # attention weights (resident)
    attn_w_h_ref,   # [H, H]
    attn_w_e_ref,   # [2He, H]
    attn_b_ref,     # [1, H]
    attn_v_ref,     # [1, H]
    # fused GRU weights (resident), gate order r|z|n along the 3H axis
    gru_wih_ref,    # [E + 2He, 3H]
    gru_whh_ref,    # [H, 3H]
    gru_bih_ref,    # [1, 3H]
    gru_bhh_ref,    # [1, 3H]
    # layernorm params (resident)
    ln_rnn_g_ref,   # [1, E + 2He]
    ln_rnn_b_ref,   # [1, E + 2He]
    ln_fc_g_ref,    # [1, H + 2He + E]
    ln_fc_b_ref,    # [1, H + 2He + E]
    # output projection (tiled over O, grid axis 1)
    fc_w_ref,       # [H + 2He + E, TO]   (optionally bf16)
    fc_b_ref,       # [1, TO]
    # outputs
    pred_ref,       # [TB, TO]
    hid_out_ref,    # [TB, H]
    a_ref,          # [TB, S]   lane-dense attention output
    # scratch (persists across the O-tile loop)
    feats_sc,       # [TB, H + 2He + E]   dtype == fc_w dtype
):
    o = pl.program_id(1)

    # Attention + GRU + layernorms once per batch tile (o == 0); results stay
    # resident across the O loop (O is the innermost grid axis).
    @pl.when(o == 0)
    def _compute_state():
        S, TB, two_he = enc_ref.shape
        E = emb_ref.shape[-1]
        H = hid_ref.shape[-1]

        emb = emb_ref[...]                       # [TB, E]
        hid = hid_ref[...]                       # [TB, H]
        enc = enc_ref[...]                       # [S, TB, 2He]

        # ---------------- attention (seq-major) ----------------
        e_enc = jnp.dot(enc.reshape(S * TB, two_he), attn_w_e_ref[...],
                        preferred_element_type=jnp.float32).reshape(S, TB, H)
        e_hid = jnp.dot(hid, attn_w_h_ref[...],
                        preferred_element_type=jnp.float32)          # [TB, H]
        energy = jnp.tanh(e_enc + e_hid[None, :, :] + attn_b_ref[...][None])
        att = jnp.sum(energy * attn_v_ref[...][None], axis=-1,
                      keepdims=True)                                 # [S, TB, 1]
        att = att + bias_ref[...]                # additive mask bias (no select)

        att_max = jnp.max(att, axis=0, keepdims=True)
        expv = jnp.exp(att - att_max)
        # exact divide: runs once per batch tile (outside the hot O loop), so
        # attention weights sum to exactly 1 (reviewer correctness concern).
        a3 = expv / jnp.sum(expv, axis=0, keepdims=True)             # [S, TB, 1]
        # lane-dense [TB, S] output (one tiny XLU transpose per batch tile)
        a_ref[...] = jnp.transpose(jnp.squeeze(a3, axis=-1))

        # weighted context: reduction over the leading S axis (VPU adds)
        weighted = jnp.sum(a3 * enc, axis=0)                         # [TB, 2He]

        # ------------- layer_norm_rnn(concat(emb, weighted)) -------------
        rnn_in = jnp.concatenate([emb, weighted], axis=-1)           # [TB, E+2He]
        mu_r = jnp.mean(rnn_in, axis=-1, keepdims=True)
        var_r = jnp.mean((rnn_in - mu_r) ** 2, axis=-1, keepdims=True)
        rnn_n = ((rnn_in - mu_r) * jax.lax.rsqrt(var_r + 1e-5)
                 * ln_rnn_g_ref[...] + ln_rnn_b_ref[...])

        # ---------------- single GRU step, fused gate matmuls ----------------
        gi = jnp.dot(rnn_n, gru_wih_ref[...],
                     preferred_element_type=jnp.float32) + gru_bih_ref[...]
        gh = jnp.dot(hid, gru_whh_ref[...],
                     preferred_element_type=jnp.float32) + gru_bhh_ref[...]
        r = jax.nn.sigmoid(gi[:, :H] + gh[:, :H])
        z = jax.nn.sigmoid(gi[:, H:2 * H] + gh[:, H:2 * H])
        n = jnp.tanh(gi[:, 2 * H:] + r * gh[:, 2 * H:])
        h_new = (1.0 - z) * n + z * hid                              # [TB, H]
        hid_out_ref[...] = h_new

        # ---- layer_norm_fc(concat(h_new, weighted, emb)), stashed once ----
        cat_fc = jnp.concatenate([h_new, weighted, emb], axis=-1)    # [TB, Dfc]
        mu_f = jnp.mean(cat_fc, axis=-1, keepdims=True)
        var_f = jnp.mean((cat_fc - mu_f) ** 2, axis=-1, keepdims=True)
        feats = ((cat_fc - mu_f) * jax.lax.rsqrt(var_f + 1e-5)
                 * ln_fc_g_ref[...] + ln_fc_b_ref[...])
        feats_sc[...] = feats.astype(feats_sc.dtype)

    # ---- hot loop: ONE K-dense MXU matmul per O tile (f32 accumulate) ----
    pred_ref[...] = (
        jnp.dot(feats_sc[...], fc_w_ref[...],
                preferred_element_type=jnp.float32)
        + fc_b_ref[...]
    ).astype(pred_ref.dtype)


# -------------------------------------------------------------------------
# VMEM limit: raise the 32 MiB scoped default, generation-aware
# -------------------------------------------------------------------------
def _vmem_limit_bytes():
    try:
        cap = pltpu.get_tpu_info().vmem_capacity_bytes   # 128 MiB v5e/v6e, 64 MiB v7x
    except Exception:
        cap = 64 * 1024 * 1024
    return int(min(cap * 3 // 4, 100 * 1024 * 1024))


# -------------------------------------------------------------------------
# Wrapper
# -------------------------------------------------------------------------
def seq_decoder_forward(params, input_tokens, hidden, encoder_outputs, mask,
                        *, tile_b=128, tile_o=256, weight_dtype=jnp.float32):
    """input_tokens: [B] int32, hidden: [B, H], encoder_outputs: [S, B, 2*He],
    mask: [B, S] (0/1). Returns (prediction[B,O], new_hidden[B,H], a[B,S])."""
    S, B, two_he = encoder_outputs.shape
    H = hidden.shape[-1]
    emb = params["embedding"][input_tokens]          # [B, E] embedding gather (wrapper glue)
    E = emb.shape[-1]
    O = params["fc_b"].shape[-1]
    Dfc = H + two_he + E

    tile_b = min(tile_b, B)                          # whole batch if it fits
    tile_o = min(tile_o, O)
    assert B % tile_b == 0 and (tile_b % 8 == 0 or tile_b == B)
    assert O % tile_o == 0 and (tile_o % 128 == 0 or tile_o == O)
    n_b, n_o = B // tile_b, O // tile_o

    # additive attention-mask bias, seq-major: 0 where valid, -1e10 where masked
    mask_bias = (jnp.transpose(mask).astype(jnp.float32)[:, :, None] - 1.0) * 1.0e10

    fc_w = params["fc_w"].astype(weight_dtype)       # bf16 option for the O loop

    def resident(arr):                               # weight stays resident in VMEM
        zeros = (0,) * arr.ndim
        return pl.BlockSpec(arr.shape, lambda b, o, _z=zeros: _z)
    # (pipeline_mode=pl.Buffered(1) on residents is a further v7x VMEM option.)
    # TODO(synk): for very long S on v7x, chunk S with an online softmax instead
    # of holding the full [S, TB, 2He] encoder tile.

    in_arrays = (
        emb, hidden, encoder_outputs, mask_bias,
        params["attn_w_h"], params["attn_w_e"], params["attn_b"], params["attn_v"],
        params["gru_wih_t"], params["gru_whh_t"], params["gru_bih"], params["gru_bhh"],
        params["ln_rnn_g"], params["ln_rnn_b"], params["ln_fc_g"], params["ln_fc_b"],
        fc_w, params["fc_b"],
    )
    in_specs = [
        pl.BlockSpec((tile_b, E), lambda b, o: (b, 0)),              # emb
        pl.BlockSpec((tile_b, H), lambda b, o: (b, 0)),              # hidden
        pl.BlockSpec((S, tile_b, two_he), lambda b, o: (0, b, 0)),   # enc (seq-major)
        pl.BlockSpec((S, tile_b, 1), lambda b, o: (0, b, 0)),        # mask bias
        resident(params["attn_w_h"]), resident(params["attn_w_e"]),
        resident(params["attn_b"]), resident(params["attn_v"]),
        resident(params["gru_wih_t"]), resident(params["gru_whh_t"]),
        resident(params["gru_bih"]), resident(params["gru_bhh"]),
        resident(params["ln_rnn_g"]), resident(params["ln_rnn_b"]),
        resident(params["ln_fc_g"]), resident(params["ln_fc_b"]),
        pl.BlockSpec((Dfc, tile_o), lambda b, o: (0, o)),            # fc_w (O-tiled)
        pl.BlockSpec((1, tile_o), lambda b, o: (0, o)),              # fc_b
    ]
    out_specs = (
        pl.BlockSpec((tile_b, tile_o), lambda b, o: (b, o)),         # prediction
        pl.BlockSpec((tile_b, H), lambda b, o: (b, 0)),              # new hidden
        pl.BlockSpec((tile_b, S), lambda b, o: (b, 0)),              # attention [B,S]
    )
    out_shape = (
        jax.ShapeDtypeStruct((B, O), jnp.float32),
        jax.ShapeDtypeStruct((B, H), jnp.float32),
        jax.ShapeDtypeStruct((B, S), jnp.float32),
    )
    grid_spec = pltpu.PrefetchScalarGridSpec(
        num_scalar_prefetch=0,
        # O axis must stay innermost: the o==0 state stash relies on it.
        grid=(n_b, n_o),
        in_specs=in_specs,
        out_specs=out_specs,
        scratch_shapes=[pltpu.VMEM((tile_b, Dfc), weight_dtype)],
    )
    pred, h_new, a = pl.pallas_call(
        seq_decoder_kernel,
        out_shape=out_shape,
        grid_spec=grid_spec,
        compiler_params=pltpu.CompilerParams(
            dimension_semantics=("parallel", "arbitrary"),
            vmem_limit_bytes=_vmem_limit_bytes(),
        ),
    )(*in_arrays)
    return pred, h_new, a


# -------------------------------------------------------------------------
# Pure-JAX reference (mirrors the PyTorch forward)
# -------------------------------------------------------------------------
def reference_forward(params, input_tokens, hidden, encoder_outputs, mask):
    S, B, _ = encoder_outputs.shape
    H = hidden.shape[-1]
    emb = params["embedding"][input_tokens]
    enc_b = jnp.transpose(encoder_outputs, (1, 0, 2))

    hid_rep = jnp.broadcast_to(hidden[:, None, :], (B, S, H))
    cat = jnp.concatenate([hid_rep, enc_b], axis=2)
    w_full = jnp.concatenate([params["attn_w_h"], params["attn_w_e"]], axis=0)
    energy = jnp.tanh(cat @ w_full + params["attn_b"][0])
    att = jnp.sum(energy * params["attn_v"][0], axis=-1)
    att = jnp.where(mask == 0.0, -1.0e10, att)
    a = jax.nn.softmax(att, axis=1)

    weighted = jnp.einsum("bs,bsd->bd", a, enc_b)

    def ln(x, g, b, eps=1e-5):
        m = x.mean(-1, keepdims=True)
        v = ((x - m) ** 2).mean(-1, keepdims=True)
        return (x - m) / jnp.sqrt(v + eps) * g + b

    rnn_in = ln(jnp.concatenate([emb, weighted], axis=1),
                params["ln_rnn_g"][0], params["ln_rnn_b"][0])
    gi = rnn_in @ params["gru_wih_t"] + params["gru_bih"][0]
    gh = hidden @ params["gru_whh_t"] + params["gru_bhh"][0]
    r = jax.nn.sigmoid(gi[:, :H] + gh[:, :H])
    z = jax.nn.sigmoid(gi[:, H:2 * H] + gh[:, H:2 * H])
    n = jnp.tanh(gi[:, 2 * H:] + r * gh[:, 2 * H:])
    h_new = (1.0 - z) * n + z * hidden

    feats = ln(jnp.concatenate([h_new, weighted, emb], axis=1),
               params["ln_fc_g"][0], params["ln_fc_b"][0])
    pred = feats @ params["fc_w"] + params["fc_b"][0]
    return pred, h_new, a


# -------------------------------------------------------------------------
# Deterministic parameter init
# -------------------------------------------------------------------------
def init_params(key, vocab, emb_dim, enc_hid, dec_hid, out_dim):
    two_he = 2 * enc_hid
    d_rnn_in = two_he + emb_dim
    d_fc_in = two_he + dec_hid + emb_dim
    ks = jax.random.split(key, 11)

    def u(k, shape, scale):
        return jax.random.uniform(k, shape, jnp.float32, -scale, scale)

    sa = 1.0 / (two_he + dec_hid) ** 0.5
    sg = 1.0 / dec_hid ** 0.5
    sf = 1.0 / d_fc_in ** 0.5
    return {
        "embedding": jax.random.normal(ks[0], (vocab, emb_dim), jnp.float32),
        # attn Linear(2*He + H, H) split into hidden / encoder parts ([in, out])
        "attn_w_h": u(ks[1], (dec_hid, dec_hid), sa),
        "attn_w_e": u(ks[2], (two_he, dec_hid), sa),
        "attn_b": u(ks[3], (1, dec_hid), sa),
        "attn_v": u(ks[4], (1, dec_hid), sg),           # v: Linear(H, 1, bias=False)
        # GRU weights pre-transposed ([in, 3H]); gate order r|z|n as in PyTorch
        "gru_wih_t": u(ks[5], (d_rnn_in, 3 * dec_hid), sg),
        "gru_whh_t": u(ks[6], (dec_hid, 3 * dec_hid), sg),
        "gru_bih": u(ks[7], (1, 3 * dec_hid), sg),
        "gru_bhh": u(ks[8], (1, 3 * dec_hid), sg),
        "ln_rnn_g": jnp.ones((1, d_rnn_in), jnp.float32),
        "ln_rnn_b": jnp.zeros((1, d_rnn_in), jnp.float32),
        "ln_fc_g": jnp.ones((1, d_fc_in), jnp.float32),
        "ln_fc_b": jnp.zeros((1, d_fc_in), jnp.float32),
        "fc_w": u(ks[9], (d_fc_in, out_dim), sf),
        "fc_b": u(ks[10], (1, out_dim), sf),
    }


# -------------------------------------------------------------------------
if __name__ == "__main__":
    B, S = 16, 8
    vocab, emb_dim = 50, 16
    enc_hid, dec_hid = 16, 32
    out_dim = 512

    key = jax.random.PRNGKey(0)
    kp0, k1, k2, k3, k4 = jax.random.split(key, 5)
    params = init_params(kp0, vocab, emb_dim, enc_hid, dec_hid, out_dim)

    input_tokens = jax.random.randint(k1, (B,), 0, vocab)
    hidden = jax.random.normal(k2, (B, dec_hid), jnp.float32)
    encoder_outputs = jax.random.normal(k3, (S, B, 2 * enc_hid), jnp.float32)
    lengths = jax.random.randint(k4, (B,), 1, S + 1)
    mask = (jnp.arange(S)[None, :] < lengths[:, None]).astype(jnp.float32)   # [B, S]

    pred_r, h_r, a_r = reference_forward(params, input_tokens, hidden,
                                         encoder_outputs, mask)

    # Run 1: f32 weights, whole-batch tile, TO=256  -> grid (1, 2)
    pred, h_new, a = seq_decoder_forward(params, input_tokens, hidden,
                                         encoder_outputs, mask)
    jax.block_until_ready((pred, h_new, a))
    assert jnp.allclose(a, a_r, atol=1e-3, rtol=1e-3), float(jnp.max(jnp.abs(a - a_r)))
    assert jnp.allclose(h_new, h_r, atol=1e-3, rtol=1e-3), float(jnp.max(jnp.abs(h_new - h_r)))
    assert jnp.allclose(pred, pred_r, atol=1e-3, rtol=1e-3), float(jnp.max(jnp.abs(pred - pred_r)))

    # Run 2: bf16 fc weights (halves the dominant HBM stream on v6e/v7x),
    # smaller tiles so both grid axes are exercised -> grid (2, 4).
    pred_b, h_b, a_b = seq_decoder_forward(params, input_tokens, hidden,
                                           encoder_outputs, mask,
                                           tile_b=8, tile_o=128,
                                           weight_dtype=jnp.bfloat16)
    jax.block_until_ready((pred_b, h_b, a_b))
    assert jnp.allclose(a_b, a_r, atol=1e-3, rtol=1e-3), float(jnp.max(jnp.abs(a_b - a_r)))
    assert jnp.allclose(h_b, h_r, atol=1e-3, rtol=1e-3), float(jnp.max(jnp.abs(h_b - h_r)))
    assert jnp.allclose(pred_b, pred_r, atol=5e-2, rtol=5e-2), float(jnp.max(jnp.abs(pred_b - pred_r)))

    print("KERNEL_OK")
</pallas_src>

<mosaic_0001>
module attributes {stable_mosaic.version = 11 : i64} {
  func.func @seq_decoder_kernel(%arg0: i32, %arg1: i32, %arg2: memref<16x16xf32, #tpu.memory_space<vmem>>, %arg3: memref<16x32xf32, #tpu.memory_space<vmem>>, %arg4: memref<8x16x32xf32, #tpu.memory_space<vmem>>, %arg5: memref<8x16x1xf32, #tpu.memory_space<vmem>>, %arg6: memref<32x32xf32, #tpu.memory_space<vmem>>, %arg7: memref<32x32xf32, #tpu.memory_space<vmem>>, %arg8: memref<1x32xf32, #tpu.memory_space<vmem>>, %arg9: memref<1x32xf32, #tpu.memory_space<vmem>>, %arg10: memref<48x96xf32, #tpu.memory_space<vmem>>, %arg11: memref<32x96xf32, #tpu.memory_space<vmem>>, %arg12: memref<1x96xf32, #tpu.memory_space<vmem>>, %arg13: memref<1x96xf32, #tpu.memory_space<vmem>>, %arg14: memref<1x48xf32, #tpu.memory_space<vmem>>, %arg15: memref<1x48xf32, #tpu.memory_space<vmem>>, %arg16: memref<1x80xf32, #tpu.memory_space<vmem>>, %arg17: memref<1x80xf32, #tpu.memory_space<vmem>>, %arg18: memref<80x256xf32, #tpu.memory_space<vmem>>, %arg19: memref<1x256xf32, #tpu.memory_space<vmem>>, %arg20: memref<16x256xf32, #tpu.memory_space<vmem>>, %arg21: memref<16x32xf32, #tpu.memory_space<vmem>>, %arg22: memref<16x8xf32, #tpu.memory_space<vmem>>, %arg23: memref<16x80xf32, #tpu.memory_space<vmem>>) attributes {dimension_semantics = [#tpu.dimension_semantics<parallel>, #tpu.dimension_semantics<arbitrary>], iteration_bounds = array<i64: 1, 2>, scalar_prefetch = 0 : i64, scratch_operands = 1 : i64, tpu.core_type = #tpu.core_type<tc>, window_params = [{transform_indices = @transform_0, window_bounds = array<i64: 16, 16>}, {transform_indices = @transform_1, window_bounds = array<i64: 16, 32>}, {transform_indices = @transform_2, window_bounds = array<i64: 8, 16, 32>}, {transform_indices = @transform_3, window_bounds = array<i64: 8, 16, 1>}, {pipeline_mode = #tpu.pipeline_mode<synchronous>, transform_indices = @transform_4, window_bounds = array<i64: 32, 32>}, {pipeline_mode = #tpu.pipeline_mode<synchronous>, transform_indices = @transform_5, window_bounds = array<i64: 32, 32>}, {pipeline_mode = #tpu.pipeline_mode<synchronous>, transform_indices = @transform_6, window_bounds = array<i64: 1, 32>}, {pipeline_mode = #tpu.pipeline_mode<synchronous>, transform_indices = @transform_7, window_bounds = array<i64: 1, 32>}, {pipeline_mode = #tpu.pipeline_mode<synchronous>, transform_indices = @transform_8, window_bounds = array<i64: 48, 96>}, {pipeline_mode = #tpu.pipeline_mode<synchronous>, transform_indices = @transform_9, window_bounds = array<i64: 32, 96>}, {pipeline_mode = #tpu.pipeline_mode<synchronous>, transform_indices = @transform_10, window_bounds = array<i64: 1, 96>}, {pipeline_mode = #tpu.pipeline_mode<synchronous>, transform_indices = @transform_11, window_bounds = array<i64: 1, 96>}, {pipeline_mode = #tpu.pipeline_mode<synchronous>, transform_indices = @transform_12, window_bounds = array<i64: 1, 48>}, {pipeline_mode = #tpu.pipeline_mode<synchronous>, transform_indices = @transform_13, window_bounds = array<i64: 1, 48>}, {pipeline_mode = #tpu.pipeline_mode<synchronous>, transform_indices = @transform_14, window_bounds = array<i64: 1, 80>}, {pipeline_mode = #tpu.pipeline_mode<synchronous>, transform_indices = @transform_15, window_bounds = array<i64: 1, 80>}, {transform_indices = @transform_16, window_bounds = array<i64: 80, 256>}, {transform_indices = @transform_17, window_bounds = array<i64: 1, 256>}, {transform_indices = @transform_18, window_bounds = array<i64: 16, 256>}, {transform_indices = @transform_19, window_bounds = array<i64: 16, 32>}, {transform_indices = @transform_20, window_bounds = array<i64: 16, 8>}]} {
    %c0_i32 = arith.constant 0 : i32
    %0 = arith.cmpi eq, %arg1, %c0_i32 : i32
    %1 = arith.extui %0 : i1 to i32
    %c0_i32_0 = arith.constant 0 : i32
    %2 = arith.cmpi ne, %1, %c0_i32_0 : i32
    scf.if %2 {
      %c0_8 = arith.constant 0 : index
      %c0_9 = arith.constant 0 : index
      %10 = vector.load %arg2[%c0_8, %c0_9] : memref<16x16xf32, #tpu.memory_space<vmem>>, vector<16x16xf32>
      %c0_10 = arith.constant 0 : index
      %c0_11 = arith.constant 0 : index
      %11 = vector.load %arg3[%c0_10, %c0_11] : memref<16x32xf32, #tpu.memory_space<vmem>>, vector<16x32xf32>
      %c0_12 = arith.constant 0 : index
      %c0_13 = arith.constant 0 : index
      %c0_14 = arith.constant 0 : index
      %12 = vector.load %arg4[%c0_12, %c0_13, %c0_14] : memref<8x16x32xf32, #tpu.memory_space<vmem>>, vector<8x16x32xf32>
      %13 = vector.shape_cast %12 : vector<8x16x32xf32> to vector<128x32xf32>
      %c0_15 = arith.constant 0 : index
      %c0_16 = arith.constant 0 : index
      %14 = vector.load %arg7[%c0_15, %c0_16] : memref<32x32xf32, #tpu.memory_space<vmem>>, vector<32x32xf32>
      %cst_17 = arith.constant dense<0.000000e+00> : vector<128x32xf32>
      %15 = tpu.matmul %13, %14, %cst_17 {dimension_numbers = #tpu.dot_dimension_numbers<[1], [0], [0], [1], [0, 0, 1, 1], [], []>} : vector<128x32xf32>, vector<32x32xf32>, vector<128x32xf32> -> vector<128x32xf32>
      %16 = vector.shape_cast %15 : vector<128x32xf32> to vector<8x16x32xf32>
      %c0_18 = arith.constant 0 : index
      %c0_19 = arith.constant 0 : index
      %17 = vector.load %arg6[%c0_18, %c0_19] : memref<32x32xf32, #tpu.memory_space<vmem>>, vector<32x32xf32>
      %cst_20 = arith.constant dense<0.000000e+00> : vector<16x32xf32>
      %18 = tpu.matmul %11, %17, %cst_20 {dimension_numbers = #tpu.dot_dimension_numbers<[1], [0], [0], [1], [0, 0, 1, 1], [], []>} : vector<16x32xf32>, vector<32x32xf32>, vector<16x32xf32> -> vector<16x32xf32>
      %19 = vector.shape_cast %18 : vector<16x32xf32> to vector<1x16x32xf32>
      %20 = vector.broadcast %19 : vector<1x16x32xf32> to vector<8x16x32xf32>
      %21 = arith.addf %16, %20 : vector<8x16x32xf32>
      %c0_21 = arith.constant 0 : index
      %c0_22 = arith.constant 0 : index
      %22 = vector.load %arg8[%c0_21, %c0_22] : memref<1x32xf32, #tpu.memory_space<vmem>>, vector<1x32xf32>
      %23 = vector.shape_cast %22 : vector<1x32xf32> to vector<1x1x32xf32>
      %24 = vector.broadcast %23 : vector<1x1x32xf32> to vector<8x16x32xf32>
      %25 = arith.addf %21, %24 : vector<8x16x32xf32>
      %26 = math.tanh %25 : vector<8x16x32xf32>
      %c0_23 = arith.constant 0 : index
      %c0_24 = arith.constant 0 : index
      %27 = vector.load %arg9[%c0_23, %c0_24] : memref<1x32xf32, #tpu.memory_space<vmem>>, vector<1x32xf32>
      %28 = vector.shape_cast %27 : vector<1x32xf32> to vector<1x1x32xf32>
      %29 = vector.broadcast %28 : vector<1x1x32xf32> to vector<8x16x32xf32>
      %30 = arith.mulf %26, %29 : vector<8x16x32xf32>
      %cst_25 = arith.constant dense<0.000000e+00> : vector<8x16xf32>
      %31 = vector.multi_reduction <add>, %30, %cst_25 [2] : vector<8x16x32xf32> to vector<8x16xf32>
      %32 = vector.shape_cast %31 : vector<8x16xf32> to vector<8x16x1xf32>
      %c0_26 = arith.constant 0 : index
      %c0_27 = arith.constant 0 : index
      %c0_28 = arith.constant 0 : index
      %33 = vector.load %arg5[%c0_26, %c0_27, %c0_28] : memref<8x16x1xf32, #tpu.memory_space<vmem>>, vector<8x16x1xf32>
      %34 = arith.addf %32, %33 : vector<8x16x1xf32>
      %cst_29 = arith.constant dense<0xFF800000> : vector<16x1xf32>
      %35 = vector.multi_reduction <maximumf>, %34, %cst_29 [0] : vector<8x16x1xf32> to vector<16x1xf32>
      %36 = vector.shape_cast %35 : vector<16x1xf32> to vector<1x16x1xf32>
      %37 = vector.broadcast %36 : vector<1x16x1xf32> to vector<8x16x1xf32>
      %38 = arith.subf %34, %37 : vector<8x16x1xf32>
      %39 = math.exp %38 : vector<8x16x1xf32>
      %cst_30 = arith.constant dense<0.000000e+00> : vector<16x1xf32>
      %40 = vector.multi_reduction <add>, %39, %cst_30 [0] : vector<8x16x1xf32> to vector<16x1xf32>
      %41 = vector.shape_cast %40 : vector<16x1xf32> to vector<1x16x1xf32>
      %42 = vector.broadcast %41 : vector<1x16x1xf32> to vector<8x16x1xf32>
      %43 = arith.divf %39, %42 : vector<8x16x1xf32>
      %44 = vector.shape_cast %43 : vector<8x16x1xf32> to vector<8x16xf32>
      %45 = tpu.transpose %44, [1, 0] : vector<8x16xf32> -> vector<16x8xf32>
      %c0_31 = arith.constant 0 : index
      %c0_32 = arith.constant 0 : index
      %46 = vector.load %arg22[%c0_31, %c0_32] : memref<16x8xf32, #tpu.memory_space<vmem>>, vector<16x8xf32>
      tpu.vector_store %arg22[%c0_31, %c0_32], %45 {strides = array<i32>} : memref<16x8xf32, #tpu.memory_space<vmem>>, vector<16x8xf32>,
      %47 = vector.broadcast %43 : vector<8x16x1xf32> to vector<8x16x32xf32>
      %48 = arith.mulf %47, %12 : vector<8x16x32xf32>
      %cst_33 = arith.constant dense<0.000000e+00> : vector<16x32xf32>
      %49 = vector.multi_reduction <add>, %48, %cst_33 [0] : vector<8x16x32xf32> to vector<16x32xf32>
      %50 = tpu.concatenate %10, %49 in 1 : vector<16x16xf32>, vector<16x32xf32> -> vector<16x48xf32>
      %cst_34 = arith.constant dense<0.000000e+00> : vector<16xf32>
      %51 = vector.multi_reduction <add>, %50, %cst_34 [1] : vector<16x48xf32> to vector<16xf32>
      %52 = vector.shape_cast %51 : vector<16xf32> to vector<16x1xf32>
      %cst_35 = arith.constant 4.800000e+01 : f32
      %53 = vector.broadcast %cst_35 : f32 to vector<16x1xf32>
      %54 = arith.divf %52, %53 : vector<16x1xf32>
      %55 = vector.broadcast %54 : vector<16x1xf32> to vector<16x48xf32>
      %56 = arith.subf %50, %55 : vector<16x48xf32>
      %57 = arith.mulf %56, %56 : vector<16x48xf32>
      %cst_36 = arith.constant dense<0.000000e+00> : vector<16xf32>
      %58 = vector.multi_reduction <add>, %57, %cst_36 [1] : vector<16x48xf32> to vector<16xf32>
      %59 = vector.shape_cast %58 : vector<16xf32> to vector<16x1xf32>
      %cst_37 = arith.constant 4.800000e+01 : f32
      %60 = vector.broadcast %cst_37 : f32 to vector<16x1xf32>
      %61 = arith.divf %59, %60 : vector<16x1xf32>
      %62 = vector.broadcast %54 : vector<16x1xf32> to vector<16x48xf32>
      %63 = arith.subf %50, %62 : vector<16x48xf32>
      %cst_38 = arith.constant 9.99999974E-6 : f32
      %64 = vector.broadcast %cst_38 : f32 to vector<16x1xf32>
      %65 = arith.addf %61, %64 : vector<16x1xf32>
      %66 = math.rsqrt %65 : vector<16x1xf32>
      %67 = vector.broadcast %66 : vector<16x1xf32> to vector<16x48xf32>
      %68 = arith.mulf %63, %67 : vector<16x48xf32>
      %c0_39 = arith.constant 0 : index
      %c0_40 = arith.constant 0 : index
      %69 = vector.load %arg14[%c0_39, %c0_40] : memref<1x48xf32, #tpu.memory_space<vmem>>, vector<1x48xf32>
      %70 = vector.broadcast %69 : vector<1x48xf32> to vector<16x48xf32>
      %71 = arith.mulf %68, %70 : vector<16x48xf32>
      %c0_41 = arith.constant 0 : index
      %c0_42 = arith.constant 0 : index
      %72 = vector.load %arg15[%c0_41, %c0_42] : memref<1x48xf32, #tpu.memory_space<vmem>>, vector<1x48xf32>
      %73 = vector.broadcast %72 : vector<1x48xf32> to vector<16x48xf32>
      %74 = arith.addf %71, %73 : vector<16x48xf32>
      %c0_43 = arith.constant 0 : index
      %c0_44 = arith.constant 0 : index
      %75 = vector.load %arg10[%c0_43, %c0_44] : memref<48x96xf32, #tpu.memory_space<vmem>>, vector<48x96xf32>
      %cst_45 = arith.constant dense<0.000000e+00> : vector<16x96xf32>
      %76 = tpu.matmul %74, %75, %cst_45 {dimension_numbers = #tpu.dot_dimension_numbers<[1], [0], [0], [1], [0, 0, 1, 1], [], []>} : vector<16x48xf32>, vector<48x96xf32>, vector<16x96xf32> -> vector<16x96xf32>
      %c0_46 = arith.constant 0 : index
      %c0_47 = arith.constant 0 : index
      %77 = vector.load %arg12[%c0_46, %c0_47] : memref<1x96xf32, #tpu.memory_space<vmem>>, vector<1x96xf32>
      %78 = vector.broadcast %77 : vector<1x96xf32> to vector<16x96xf32>
      %79 = arith.addf %76, %78 : vector<16x96xf32>
      %c0_48 = arith.constant 0 : index
      %c0_49 = arith.constant 0 : index
      %80 = vector.load %arg11[%c0_48, %c0_49] : memref<32x96xf32, #tpu.memory_space<vmem>>, vector<32x96xf32>
      %cst_50 = arith.constant dense<0.000000e+00> : vector<16x96xf32>
      %81 = tpu.matmul %11, %80, %cst_50 {dimension_numbers = #tpu.dot_dimension_numbers<[1], [0], [0], [1], [0, 0, 1, 1], [], []>} : vector<16x32xf32>, vector<32x96xf32>, vector<16x96xf32> -> vector<16x96xf32>
      %c0_51 = arith.constant 0 : index
      %c0_52 = arith.constant 0 : index
      %82 = vector.load %arg13[%c0_51, %c0_52] : memref<1x96xf32, #tpu.memory_space<vmem>>, vector<1x96xf32>
      %83 = vector.broadcast %82 : vector<1x96xf32> to vector<16x96xf32>
      %84 = arith.addf %81, %83 : vector<16x96xf32>
      %85 = vector.extract_strided_slice %79 {offsets = [0, 0], sizes = [16, 32], strides = [1, 1]} : vector<16x96xf32> to vector<16x32xf32>
      %86 = vector.extract_strided_slice %84 {offsets = [0, 0], sizes = [16, 32], strides = [1, 1]} : vector<16x96xf32> to vector<16x32xf32>
      %87 = arith.addf %85, %86 : vector<16x32xf32>
      %88 = arith.negf %87 : vector<16x32xf32>
      %89 = math.exp %88 : vector<16x32xf32>
      %cst_53 = arith.constant 1.000000e+00 : f32
      %90 = vector.broadcast %cst_53 : f32 to vector<16x32xf32>
      %91 = arith.addf %90, %89 : vector<16x32xf32>
      %92 = arith.divf %90, %91 : vector<16x32xf32>
      %93 = vector.extract_strided_slice %79 {offsets = [0, 32], sizes = [16, 32], strides = [1, 1]} : vector<16x96xf32> to vector<16x32xf32>
      %94 = vector.extract_strided_slice %84 {offsets = [0, 32], sizes = [16, 32], strides = [1, 1]} : vector<16x96xf32> to vector<16x32xf32>
      %95 = arith.addf %93, %94 : vector<16x32xf32>
      %96 = arith.negf %95 : vector<16x32xf32>
      %97 = math.exp %96 : vector<16x32xf32>
      %cst_54 = arith.constant 1.000000e+00 : f32
      %98 = vector.broadcast %cst_54 : f32 to vector<16x32xf32>
      %99 = arith.addf %98, %97 : vector<16x32xf32>
      %100 = arith.divf %98, %99 : vector<16x32xf32>
      %101 = vector.extract_strided_slice %79 {offsets = [0, 64], sizes = [16, 32], strides = [1, 1]} : vector<16x96xf32> to vector<16x32xf32>
      %102 = vector.extract_strided_slice %84 {offsets = [0, 64], sizes = [16, 32], strides = [1, 1]} : vector<16x96xf32> to vector<16x32xf32>
      %103 = arith.mulf %92, %102 : vector<16x32xf32>
      %104 = arith.addf %101, %103 : vector<16x32xf32>
      %105 = math.tanh %104 : vector<16x32xf32>
      %cst_55 = arith.constant 1.000000e+00 : f32
      %106 = vector.broadcast %cst_55 : f32 to vector<16x32xf32>
      %107 = arith.subf %106, %100 : vector<16x32xf32>
      %108 = arith.mulf %107, %105 : vector<16x32xf32>
      %109 = arith.mulf %100, %11 : vector<16x32xf32>
      %110 = arith.addf %108, %109 : vector<16x32xf32>
      %c0_56 = arith.constant 0 : index
      %c0_57 = arith.constant 0 : index
      %111 = vector.load %arg21[%c0_56, %c0_57] : memref<16x32xf32, #tpu.memory_space<vmem>>, vector<16x32xf32>
      tpu.vector_store %arg21[%c0_56, %c0_57], %110 {strides = array<i32>} : memref<16x32xf32, #tpu.memory_space<vmem>>, vector<16x32xf32>,
      %112 = tpu.concatenate %110, %49, %10 in 1 : vector<16x32xf32>, vector<16x32xf32>, vector<16x16xf32> -> vector<16x80xf32>
      %cst_58 = arith.constant dense<0.000000e+00> : vector<16xf32>
      %113 = vector.multi_reduction <add>, %112, %cst_58 [1] : vector<16x80xf32> to vector<16xf32>
      %114 = vector.shape_cast %113 : vector<16xf32> to vector<16x1xf32>
      %cst_59 = arith.constant 8.000000e+01 : f32
      %115 = vector.broadcast %cst_59 : f32 to vector<16x1xf32>
      %116 = arith.divf %114, %115 : vector<16x1xf32>
      %117 = vector.broadcast %116 : vector<16x1xf32> to vector<16x80xf32>
      %118 = arith.subf %112, %117 : vector<16x80xf32>
      %119 = arith.mulf %118, %118 : vector<16x80xf32>
      %cst_60 = arith.constant dense<0.000000e+00> : vector<16xf32>
      %120 = vector.multi_reduction <add>, %119, %cst_60 [1] : vector<16x80xf32> to vector<16xf32>
      %121 = vector.shape_cast %120 : vector<16xf32> to vector<16x1xf32>
      %cst_61 = arith.constant 8.000000e+01 : f32
      %122 = vector.broadcast %cst_61 : f32 to vector<16x1xf32>
      %123 = arith.divf %121, %122 : vector<16x1xf32>
      %124 = vector.broadcast %116 : vector<16x1xf32> to vector<16x80xf32>
      %125 = arith.subf %112, %124 : vector<16x80xf32>
      %cst_62 = arith.constant 9.99999974E-6 : f32
      %126 = vector.broadcast %cst_62 : f32 to vector<16x1xf32>
      %127 = arith.addf %123, %126 : vector<16x1xf32>
      %128 = math.rsqrt %127 : vector<16x1xf32>
      %129 = vector.broadcast %128 : vector<16x1xf32> to vector<16x80xf32>
      %130 = arith.mulf %125, %129 : vector<16x80xf32>
      %c0_63 = arith.constant 0 : index
      %c0_64 = arith.constant 0 : index
      %131 = vector.load %arg16[%c0_63, %c0_64] : memref<1x80xf32, #tpu.memory_space<vmem>>, vector<1x80xf32>
      %132 = vector.broadcast %131 : vector<1x80xf32> to vector<16x80xf32>
      %133 = arith.mulf %130, %132 : vector<16x80xf32>
      %c0_65 = arith.constant 0 : index
      %c0_66 = arith.constant 0 : index
      %134 = vector.load %arg17[%c0_65, %c0_66] : memref<1x80xf32, #tpu.memory_space<vmem>>, vector<1x80xf32>
      %135 = vector.broadcast %134 : vector<1x80xf32> to vector<16x80xf32>
      %136 = arith.addf %133, %135 : vector<16x80xf32>
      %c0_67 = arith.constant 0 : index
      %c0_68 = arith.constant 0 : index
      %137 = vector.load %arg23[%c0_67, %c0_68] : memref<16x80xf32, #tpu.memory_space<vmem>>, vector<16x80xf32>
      tpu.vector_store %arg23[%c0_67, %c0_68], %136 {strides = array<i32>} : memref<16x80xf32, #tpu.memory_space<vmem>>, vector<16x80xf32>,
    } else {
    }
    %c0 = arith.constant 0 : index
    %c0_1 = arith.constant 0 : index
    %3 = vector.load %arg23[%c0, %c0_1] : memref<16x80xf32, #tpu.memory_space<vmem>>, vector<16x80xf32>
    %c0_2 = arith.constant 0 : index
    %c0_3 = arith.constant 0 : index
    %4 = vector.load %arg18[%c0_2, %c0_3] : memref<80x256xf32, #tpu.memory_space<vmem>>, vector<80x256xf32>
    %cst = arith.constant dense<0.000000e+00> : vector<16x256xf32>
    %5 = tpu.matmul %3, %4, %cst {dimension_numbers = #tpu.dot_dimension_numbers<[1], [0], [0], [1], [0, 0, 1, 1], [], []>} : vector<16x80xf32>, vector<80x256xf32>, vector<16x256xf32> -> vector<16x256xf32>
    %c0_4 = arith.constant 0 : index
    %c0_5 = arith.constant 0 : index
    %6 = vector.load %arg19[%c0_4, %c0_5] : memref<1x256xf32, #tpu.memory_space<vmem>>, vector<1x256xf32>
    %7 = vector.broadcast %6 : vector<1x256xf32> to vector<16x256xf32>
    %8 = arith.addf %5, %7 : vector<16x256xf32>
    %c0_6 = arith.constant 0 : index
    %c0_7 = arith.constant 0 : index
    %9 = vector.load %arg20[%c0_6, %c0_7] : memref<16x256xf32, #tpu.memory_space<vmem>>, vector<16x256xf32>
    tpu.vector_store %arg20[%c0_6, %c0_7], %8 {strides = array<i32>} : memref<16x256xf32, #tpu.memory_space<vmem>>, vector<16x256xf32>,
    return
  }
  func.func @transform_0(%arg0: i32, %arg1: i32) -> (i32, i32) {
    %c0_i32 = arith.constant 0 : i32
    %c0_i32_0 = arith.constant 0 : i32
    return %arg0, %c0_i32 : i32, i32
  }
  func.func @transform_1(%arg0: i32, %arg1: i32) -> (i32, i32) {
    %c0_i32 = arith.constant 0 : i32
    %c0_i32_0 = arith.constant 0 : i32
    return %arg0, %c0_i32 : i32, i32
  }
  func.func @transform_2(%arg0: i32, %arg1: i32) -> (i32, i32, i32) {
    %c0_i32 = arith.constant 0 : i32
    %c0_i32_0 = arith.constant 0 : i32
    %c0_i32_1 = arith.constant 0 : i32
    return %c0_i32, %arg0, %c0_i32_0 : i32, i32, i32
  }
  func.func @transform_3(%arg0: i32, %arg1: i32) -> (i32, i32, i32) {
    %c0_i32 = arith.constant 0 : i32
    %c0_i32_0 = arith.constant 0 : i32
    %c0_i32_1 = arith.constant 0 : i32
    return %c0_i32, %arg0, %c0_i32_0 : i32, i32, i32
  }
  func.func @transform_4(%arg0: i32, %arg1: i32) -> (i32, i32) {
    %c0_i32 = arith.constant 0 : i32
    %c0_i32_0 = arith.constant 0 : i32
    %c0_i32_1 = arith.constant 0 : i32
    return %c0_i32, %c0_i32_0 : i32, i32
  }
  func.func @transform_5(%arg0: i32, %arg1: i32) -> (i32, i32) {
    %c0_i32 = arith.constant 0 : i32
    %c0_i32_0 = arith.constant 0 : i32
    %c0_i32_1 = arith.constant 0 : i32
    return %c0_i32, %c0_i32_0 : i32, i32
  }
  func.func @transform_6(%arg0: i32, %arg1: i32) -> (i32, i32) {
    %c0_i32 = arith.constant 0 : i32
    %c0_i32_0 = arith.constant 0 : i32
    %c0_i32_1 = arith.constant 0 : i32
    return %c0_i32, %c0_i32_0 : i32, i32
  }
  func.func @transform_7(%arg0: i32, %arg1: i32) -> (i32, i32) {
    %c0_i32 = arith.constant 0 : i32
    %c0_i32_0 = arith.constant 0 : i32
    %c0_i32_1 = arith.constant 0 : i32
    return %c0_i32, %c0_i32_0 : i32, i32
  }
  func.func @transform_8(%arg0: i32, %arg1: i32) -> (i32, i32) {
    %c0_i32 = arith.constant 0 : i32
    %c0_i32_0 = arith.constant 0 : i32
    %c0_i32_1 = arith.constant 0 : i32
    return %c0_i32, %c0_i32_0 : i32, i32
  }
  func.func @transform_9(%arg0: i32, %arg1: i32) -> (i32, i32) {
    %c0_i32 = arith.constant 0 : i32
    %c0_i32_0 = arith.constant 0 : i32
    %c0_i32_1 = arith.constant 0 : i32
    return %c0_i32, %c0_i32_0 : i32, i32
  }
  func.func @transform_10(%arg0: i32, %arg1: i32) -> (i32, i32) {
    %c0_i32 = arith.constant 0 : i32
    %c0_i32_0 = arith.constant 0 : i32
    %c0_i32_1 = arith.constant 0 : i32
    return %c0_i32, %c0_i32_0 : i32, i32
  }
  func.func @transform_11(%arg0: i32, %arg1: i32) -> (i32, i32) {
    %c0_i32 = arith.constant 0 : i32
    %c0_i32_0 = arith.constant 0 : i32
    %c0_i32_1 = arith.constant 0 : i32
    return %c0_i32, %c0_i32_0 : i32, i32
  }
  func.func @transform_12(%arg0: i32, %arg1: i32) -> (i32, i32) {
    %c0_i32 = arith.constant 0 : i32
    %c0_i32_0 = arith.constant 0 : i32
    %c0_i32_1 = arith.constant 0 : i32
    return %c0_i32, %c0_i32_0 : i32, i32
  }
  func.func @transform_13(%arg0: i32, %arg1: i32) -> (i32, i32) {
    %c0_i32 = arith.constant 0 : i32
    %c0_i32_0 = arith.constant 0 : i32
    %c0_i32_1 = arith.constant 0 : i32
    return %c0_i32, %c0_i32_0 : i32, i32
  }
  func.func @transform_14(%arg0: i32, %arg1: i32) -> (i32, i32) {
    %c0_i32 = arith.constant 0 : i32
    %c0_i32_0 = arith.constant 0 : i32
    %c0_i32_1 = arith.constant 0 : i32
    return %c0_i32, %c0_i32_0 : i32, i32
  }
  func.func @transform_15(%arg0: i32, %arg1: i32) -> (i32, i32) {
    %c0_i32 = arith.constant 0 : i32
    %c0_i32_0 = arith.constant 0 : i32
    %c0_i32_1 = arith.constant 0 : i32
    return %c0_i32, %c0_i32_0 : i32, i32
  }
  func.func @transform_16(%arg0: i32, %arg1: i32) -> (i32, i32) {
    %c0_i32 = arith.constant 0 : i32
    %c0_i32_0 = arith.constant 0 : i32
    return %c0_i32, %arg1 : i32, i32
  }
  func.func @transform_17(%arg0: i32, %arg1: i32) -> (i32, i32) {
    %c0_i32 = arith.constant 0 : i32
    %c0_i32_0 = arith.constant 0 : i32
    return %c0_i32, %arg1 : i32, i32
  }
  func.func @transform_18(%arg0: i32, %arg1: i32) -> (i32, i32) {
    %c0_i32 = arith.constant 0 : i32
    return %arg0, %arg1 : i32, i32
  }
  func.func @transform_19(%arg0: i32, %arg1: i32) -> (i32, i32) {
    %c0_i32 = arith.constant 0 : i32
    %c0_i32_0 = arith.constant 0 : i32
    return %arg0, %c0_i32 : i32, i32
  }
  func.func @transform_20(%arg0: i32, %arg1: i32) -> (i32, i32) {
    %c0_i32 = arith.constant 0 : i32
    %c0_i32_0 = arith.constant 0 : i32
    return %arg0, %c0_i32 : i32, i32
  }
}

</mosaic_0001>

<bundles_post_ra>
// kernel: tpu_custom_call.1
= control target key start
LH: loop header
LB: loop body
LE: loop exit
PB: predicated region body
PF: predicated region fallthrough
CT: control target
= control target key end

     0   :  { %s3801_s0 = inlined_call_operand.hbm [shape: f32[16,16], index: 0, kind: input, shape index: {}]   ;;  %s3802_s1 = inlined_call_operand.hbm [shape: f32[16,32], index: 1, kind: input, shape index: {}]   ;;  %s3803_s2 = inlined_call_operand.vmem [shape: f32[8,16,32], index: 2, kind: input, shape index: {}]   ;;  %s3804_s3 = inlined_call_operand.vmem [shape: f32[8,16,1], index: 3, kind: input, shape index: {}]   ;;  %s3805_s4 = inlined_call_operand.hbm [shape: f32[32,32], index: 4, kind: input, shape index: {}]   ;;  %s3806_s5 = inlined_call_operand.hbm [shape: f32[32,32], index: 5, kind: input, shape index: {}]   ;;  %s3807_s6 = inlined_call_operand.vmem [shape: f32[1,32], index: 6, kind: input, shape index: {}]   ;;  %s3808_s7 = inlined_call_operand.vmem [shape: f32[1,32], index: 7, kind: input, shape index: {}]   ;;  %s3809_s8 = inlined_call_operand.hbm [shape: f32[48,96], index: 8, kind: input, shape index: {}]   ;;  %s3810_s9 = inlined_call_operand.hbm [shape: f32[32,96], index: 9, kind: input, shape index: {}]   ;;  %s3811_s10 = inlined_call_operand.vmem [shape: f32[1,96], index: 10, kind: input, shape index: {}]   ;;  %s3812_s11 = inlined_call_operand.vmem [shape: f32[1,96], index: 11, kind: input, shape index: {}]   ;;  %s3813_s12 = inlined_call_operand.vmem [shape: f32[1,48], index: 12, kind: input, shape index: {}]   ;;  %s3814_s13 = inlined_call_operand.vmem [shape: f32[1,48], index: 13, kind: input, shape index: {}]   ;;  %s3815_s14 = inlined_call_operand.vmem [shape: f32[1,80], index: 14, kind: input, shape index: {}]   ;;  %s3816_s15 = inlined_call_operand.vmem [shape: f32[1,80], index: 15, kind: input, shape index: {}]   ;;  %s3817_s16 = inlined_call_operand.hbm [shape: f32[80,512], index: 16, kind: input, shape index: {}]   ;;  %s3818_s17 = inlined_call_operand.vmem [shape: f32[1,512], index: 17, kind: input, shape index: {}]   ;;  %s3819_s18 = inlined_call_operand.hbm [shape: f32[16,512], index: 18, kind: output, shape index: {0}]   ;;  %s3820_s19 = inlined_call_operand.hbm [shape: f32[16,32], index: 19, kind: output, shape index: {1}]   ;;  %s3821_s20 = inlined_call_operand.vmem [shape: f32[16,8], index: 20, kind: output, shape index: {2}]  }
   0x1   :  { %3828 = sst [smem:[#allocation26_spill]] %s3801_s0 }
   0x2   :  { %3829 = sst [smem:[#allocation27_spill]] %s3802_s1 }
   0x3   :  { %3830 = sst [smem:[#allocation28_spill]] %s3803_s2 }
   0x4   :  { %3831 = sst [smem:[#allocation29_spill]] %s3804_s3 }
   0x5   :  { %3832 = sst [smem:[#allocation30_spill]] %s3805_s4 }
   0x6   :  { %3833 = sst [smem:[#allocation31_spill]] %s3806_s5 }
   0x7   :  { %3834 = sst [smem:[#allocation32_spill]] %s3809_s8 }
   0x8   :  { %3835 = sst [smem:[#allocation33_spill]] %s3810_s9 }
   0x9   :  { %3836 = sst [smem:[#allocation34_spill]] %s3811_s10 }
   0xa   :  { %3837 = sst [smem:[#allocation35_spill]] %s3812_s11 }
   0xb   :  { %3838 = sst [smem:[#allocation36_spill]] %s3813_s12 }
   0xc   :  { %3839 = sst [smem:[#allocation37_spill]] %s3814_s13 }
   0xd   :  { %3840 = sst [smem:[#allocation38_spill]] %s3815_s14 }
   0xe   :  { %3841 = sst [smem:[#allocation39_spill]] %s3816_s15 }
   0xf   :  { %3842 = sst [smem:[#allocation40_spill]] %s3819_s18 }
  0x10   :  { %3843 = sst [smem:[#allocation41_spill]] %s3820_s19 }
  0x11   :  { %3844 = sst [smem:[#allocation42_spill]] %s3821_s20 }
  0x12   :  { %26 = vsyncpa [#allocation4], 0 }
  0x13   :  { %27 = vsyncpa [#allocation7], 0 }
  0x14   :  { %28 = vsyncpa [#allocation10], 0 }
  0x15   :  { %29 = vsyncpa [#allocation13], 0 }
  0x16   :  { %30 = vsyncpa [#allocation5], 0 }
  0x17   :  { %32 = vsyncpa [#allocation5 + $0x1], 0 }
  0x18   :  { %33 = vsyncpa [#allocation17], 0  ;;  %s3042_s1 = smov 0   ;;  %s3044_s22 = smov 0  }
  0x19   :  { %s3046_s23 = smov 0   ;;  %s3048_s24 = smov 0  }
  0x1a   :  { %s3050_s2 = smov 0   ;;  %s3052_s25 = smov 0  }
  0x1b LB: > { %s3073_s3 = sadd.s32 4294967295, %s2911_s25   ;;  %p2223_p0 = scmp.ge.s32.totalorder %s2911_s25, 1  ;;  %s2911_s25 = sphi %s3052_s25, %s39_s25   ;;  %s2907_s2 = sphi %s3050_s2, %s3874_s2   ;;  %s2903_s24 = sphi %s3048_s24, %s3873_s24   ;;  %s2899_s23 = sphi %s3046_s23, %s3872_s23   ;;  %s2895_s22 = sphi %s3044_s22, %s3871_s22   ;;  %s2891_s1 = sphi %s3042_s1, %s3870_s1  }
  0x1c   : > { %p428_p1 = scmp.eq.s32.totalorder %s3073_s3, 0  ;;  %p544_p2 = scmp.lt.s32.totalorder %s2911_s25, 3 }
  0x1d   : > { %s3845_s28 = sld [smem:[#allocation26_spill]]  ;;  %s2913_s30 = smov [#allocation3]  }
  0x1e   : > { %p3081_p3 = pnand %p2223_p0, %p544_p2  ;;  %s560_s0 = sshll.u32 %s2913_s30, 4  ;;  %s561_s0 = int_to_ptr.vmem [resolvable:$true] %s560_s0 }
  0x1f   : > { %p2232_p6 = scmp.ge.s32.totalorder %s2911_s25, 2  ;;  %s2914_s19 = smov 128  }
  0x20   : > { %p2350_p4 = pneg %p3081_p3  ;;  %s2915_s15 = smov 8  }
  0x21   : > { %s2916_s30 = smov [#allocation6]   ;;  %s3849_s5 = sld [smem:[#allocation31_spill]] }
  0x22   : > { %p3089_p5 = pnand %p2350_p4, %p428_p1  ;;  %s577_s14 = sshll.u32 %s2916_s30, 4  ;;  %s578_s14 = int_to_ptr.vmem [resolvable:$true] %s577_s14 }
  0x23   : > { %s558_s4 = sshll.u32 %s3845_s28, 4  ;;  %s3848_s28 = sld [smem:[#allocation27_spill]]  ;;  %s559_s4 = int_to_ptr.hbm [resolvable:$true] %s558_s4 }
  0x24   : > { %2353 = dma.hbm_to_vmem [thread:$0]  (!%p3089_p5), %s559_s4, 256, %s561_s0, [#allocation4], %s2914_s19, %s2914_s19, %s2915_s15  }
  0x25   : > { %s2917_s12 = smov [#allocation9]   ;;  %s2918_s10 = smov [#allocation8]  }
  0x26   : > { %s623_s4 = sshll.u32 %s2917_s12, 4  ;;  %s609_s20 = sshll.u32 %s2918_s10, 4  ;;  %s624_s4 = int_to_ptr.vmem [resolvable:$true] %s623_s4  ;;  %s610_s20 = int_to_ptr.vmem [resolvable:$true] %s609_s20 }
  0x27   : > { %s621_s11 = sshll.u32 %s3849_s5, 4  ;;  %s3851_s8 = sld [smem:[#allocation32_spill]]  ;;  %s622_s11 = int_to_ptr.hbm [resolvable:$true] %s621_s11 }
  0x28   : > { %2362 = dma.hbm_to_vmem [thread:$0]  (!%p3089_p5), %s622_s11, 512, %s624_s4, [#allocation10], %s2914_s19, %s2914_s19, %s2915_s15  }
  0x29   : > { %s575_s18 = sshll.u32 %s3848_s28, 4  ;;  %s3850_s28 = sld [smem:[#allocation30_spill]]  ;;  %s576_s18 = int_to_ptr.hbm [resolvable:$true] %s575_s18 }
  0x2a   : > { %2356 = dma.hbm_to_vmem [thread:$0]  (!%p3089_p5), %s576_s18, 256, %s578_s14, [#allocation7], %s2914_s19, %s2914_s19, %s2915_s15  }
  0x2b   : > { %s3852_s9 = sld [smem:[#allocation33_spill]]  ;;  %s2919_s26 = smov [#allocation11]  }
  0x2c   : > { %s643_s27 = sshll.u32 %s2919_s26, 4  ;;  %s2222_s4 = sadd.s32 4294967294, %s2911_s25   ;;  %s644_s27 = int_to_ptr.vmem [resolvable:$true] %s643_s27 }
  0x2d   : > { %s641_s18 = sshll.u32 %s3851_s8, 4  ;;  %s48_s10 = sadd.s32 1, %s2907_s2  ;;  %s642_s18 = int_to_ptr.hbm [resolvable:$true] %s641_s18 }
  0x2e   : > { %2365 = dma.hbm_to_vmem [thread:$0]  (!%p3089_p5), %s642_s18, 768, %s644_s27, [#allocation10], %s2914_s19, %s2914_s19, %s2915_s15  }
  0x2f   : > { %s607_s13 = sshll.u32 %s3850_s28, 4  ;;  %s2920_s28 = smov [#allocation12]   ;;  %s608_s13 = int_to_ptr.hbm [resolvable:$true] %s607_s13 }
  0x30   : > { %2359 = dma.hbm_to_vmem [thread:$0]  (!%p3089_p5), %s608_s13, 512, %s610_s20, [#allocation7], %s2914_s19, %s2914_s19, %s2915_s15  }
  0x31   : > { %s655_s30 = sshll.u32 %s3852_s9, 4  ;;  %s657_s13 = sshll.u32 %s2920_s28, 4  ;;  %s656_s30 = int_to_ptr.hbm [resolvable:$true] %s655_s30  ;;  %s658_s13 = int_to_ptr.vmem [resolvable:$true] %s657_s13 }
  0x32   : > { %2368 = dma.hbm_to_vmem [thread:$0]  (!%p3089_p5), %s656_s30, 512, %s658_s13, [#allocation13], %s2914_s19, %s2914_s19, %s2915_s15  }
  0x33   : > { %p49_p7 = scmp.ge.s32.totalorder %s48_s10, 2  ;;  %s414_s20 = sadd.s32 1, %s2899_s23 }
  0x34   : > { %p421_p8 = scmp.ne.s32.totalorder %s2899_s23, %s2895_s22  ;;  %p422_p9 = scmp.eq.s32.totalorder %s2911_s25, 0 }
  0x35   : > { %s3876_s10 = smov (%p49_p7, %s48_s10), 0  ;;  %p427_p11 = scmp.ne.s32.totalorder %s2895_s22, %s2891_s1 }
  0x36   : > { %3853 = sst [smem:[#allocation25_spill]] %s3876_s10  ;;  %p3147_p10 = por %p422_p9, %p421_p8 }
  0x37   : > { %s411_s15 = ssub.s32 %s2907_s2, %s3876_s10  ;;  %p479_p12 = scmp.eq.s32.totalorder %s3073_s3, 1 }
  0x38   : > { %p412_p13 = scmp.eq.s32.totalorder %s411_s15, 0  ;;  %p3158_p0 = por %p428_p1, %p427_p11 }
  0x39   : > { %p3164_p2 = por %p479_p12, %p421_p8  ;;  %p485_p4 = scmp.eq.s32.totalorder %s2222_s4, 1 }
  0x3a   : > { %s3169_s14 = scalar_select %p412_p13, %s2899_s23, %s414_s20  }
  0x3b   : > { %p3171_p5 = por %p485_p4, %p427_p11  ;;  %p2383_p7 = scmp.lt.s32.totalorder %s2911_s25, 2 }
  0x3c   : > { %s689_s11 = sand.u32 1, %s2911_s25   ;;  %s691_s12 = sand.u32 1, %s2899_s23  }
  0x3d   : > { %s2316_s30 = smul.u32 160, %s691_s12  ;;  %s2282_s26 = sshll.u32 %s2907_s2, 4 }
  0x3e   : > { %p2370_p9 = pnand %p2383_p7, %p3147_p10  ;;  %s698_s13 = scalar_lea.hbm %s3817_s16, %s2282_s26 }
  0x3f   : > { %s699_s15 = sshll.u32 %s698_s13, 4  ;;  %s693_s5 = scalar_lea.vmem [#allocation14], %s2316_s30  ;;  %s700_s15 = int_to_ptr.hbm [resolvable:$true] %s699_s15 }
  0x40   : > { %s701_s4 = sshll.u32 %s693_s5, 4  ;;  %s690_s20 = scalar_lea.sflag [#allocation4], %s689_s11  ;;  %s702_s4 = int_to_ptr.vmem [resolvable:$true] %s701_s4 }
  0x41   : > { %s2921_s8 = smov 512   ;;  %s2922_s9 = smov 256  }
  0x42   : > { %s2923_s10 = smov 16   ;;  %721 = sbr.rel (%p3081_p3) target bundleno = 1945 (0x799), region = 92 }
  0x43   : > { %2372 = dma.hbm_to_vmem [thread:$0]  (!%p2370_p9), %s700_s15, 2560, %s702_s4, %s690_s20, %s2921_s8, %s2922_s9, %s2923_s10  }
  0x47   : > { %2862 = dma.done.wait (%p428_p1), [#allocation4], 256  }
  0x48   : > { %2864 = vsyncadd (%p428_p1), [#allocation4], 4294967040 }
  0x49   : > { %2866 = dma.done.wait (%p428_p1), [#allocation7], 768  }
  0x4a   : > { %2868 = vsyncadd (%p428_p1), [#allocation7], 4294966528 }
  0x4b   : > { %2870 = dma.done.wait (%p428_p1), [#allocation10], 1280  }
  0x4c   : > { %2872 = vsyncadd (%p428_p1), [#allocation10], 4294966016 }
  0x4d   : > { %2874 = dma.done.wait (%p428_p1), [#allocation13], 512  }
  0x4e   : > { %2876 = vsyncadd (%p428_p1), [#allocation13], 4294966784  ;;  %s753_s5 = sand.u32 1, %s3073_s3   ;;  %s3204_s8 = sand.u32 1, %s2895_s22  }
  0x4f   : > { %s2317_s9 = smul.u32 160, %s3204_s8  ;;  %s754_s29 = scalar_lea.sflag [#allocation4], %s753_s5 }
  0x51   : > { %s3207_s10 = scalar_lea.vmem [#allocation14], %s2317_s9 }
  0x52   : > { %2878 = dma.done.wait (%p3158_p0), %s754_s29, 2560  }
  0x53   : > { %2880 = vsyncadd (%p3158_p0), %s754_s29, 4294964736  ;;  %s2242_s21 = sshll.u32 %s3204_s8, 5  ;;  %s2243_s11 = sshll.u32 %s2903_s24, 1 }
  0x54   : > { %p850_p1 = scmp.lt.s32.totalorder %s2243_s11, 3  ;;  %s3221_s27 = scalar_lea.vmem [#allocation15], %s2242_s21 }
  0x55   : > { %p2244_p3 = scmp.ne.s32.totalorder %s2903_s24, 0 }
  0x56   : > { %s3878_s11 = smov (!%p850_p1, %s2243_s11), 3  ;;  %s3858_s13 = sld [smem:[#allocation28_spill]] (!%p2244_p3) }
  0x57   : > { %s852_s26 = scalar_lea.vmem %s3818_s17, %s3878_s11  ;;  %866 = sbr.rel (%p2244_p3) target bundleno = 1783 (0x6f7), region = 124 }
  0x58   : > { %s3859_s5 = sld [smem:[#allocation29_spill]] (!%p2244_p3)  ;;  %s2925_s9 = smov (!%p2244_p3), 16  }
  0x59   : > { %s3860_s12 = sld [smem:[#allocation36_spill]] (!%p2244_p3)  ;;  %s2928_s30 = smov (!%p2244_p3), 32  }
  0x5a   : > { %s3861_s28 = sld [smem:[#allocation37_spill]] (!%p2244_p3)  ;;  %s2929_s19 = smov (!%p2244_p3), 96  }
  0x5b   : > { %s3862_s20 = sld [smem:[#allocation35_spill]] (!%p2244_p3) }
  0x5c   : > { %v890_v0 = vld [vmem:[#allocation9 + $0x18] sm:$0xff]  ;;  %v889_v1 = vld [vmem:[#allocation9 + $0x10] sm:$0xff]  ;;  %v888_v2 = vld [vmem:[#allocation9 + $0x8] sm:$0xff]  ;;  %vm891_vm0 = vcmask 261120   ;;  %vm1190_vm1 = vcmask 7168   ;;  %vm1412_vm10 = vcmask 130112  }
  0x5d   : > { %952 = vmatpush.msra.mxu0 %v890_v0  ;;  %2284 = vmatpush.msra.mxu1 %v890_v0  ;;  %v887_v3 = vld [vmem:[#allocation9] sm:$0xff]  ;;  %v3227_v4 = vld [vmem:[%s3858_s13] sm:$0xff]  ;;  %v1008_v6 = vld [vmem:[#allocation8 + $0x18] sm:$0xff]  ;;  %vm1435_vm11 = vcmask 1041409   ;;  %vm1437_vm12 = vcmask 1042434   ;;  %vm1439_vm13 = vcmask 1043459  }
  0x5e   : > { %2286 = vmatpush.msra.mxu3 %v890_v0  ;;  %2285 = vmatpush.msra.mxu2 %v890_v0  ;;  %v3232_v5 = vld [vmem:[%s3858_s13 + $0x30] sm:$0xff]  ;;  %v1007_v7 = vld [vmem:[#allocation8 + $0x10] sm:$0xff]  ;;  %v1006_v10 = vld [vmem:[#allocation8 + $0x8] sm:$0xff]  ;;  %vm1441_vm14 = vcmask 1044484   ;;  %vm1443_vm15 = vcmask 1045509   ;;  %s3864_s4 = sld [smem:[#allocation42_spill]] }
  0x5f   : > { %953 = vmatpush.msra.mxu0 %v889_v1  ;;  %2287 = vmatpush.msra.mxu1 %v889_v1  ;;  %v3237_v8 = vld [vmem:[%s3858_s13 + $0x60] sm:$0xff]  ;;  %v3246_v9 = vld [vmem:[%s3858_s13 + $0x50] sm:$0xff]  ;;  %v3255_v12 = vld [vmem:[%s3858_s13 + $0x8] sm:$0xff] }
  0x60   : > { %2289 = vmatpush.msra.mxu3 %v889_v1  ;;  %2288 = vmatpush.msra.mxu2 %v889_v1  ;;  %v1005_v11 = vld [vmem:[#allocation8] sm:$0xff]  ;;  %v3260_v13 = vld [vmem:[%s3858_s13 + $0x38] sm:$0xff]  ;;  %v3265_v14 = vld [vmem:[%s3858_s13 + $0x68] sm:$0xff] }
  0x61   : > { %954 = vmatpush.msra.mxu0 %v888_v2  ;;  %2290 = vmatpush.msra.mxu1 %v888_v2  ;;  %v3274_v15 = vld [vmem:[%s3858_s13 + $0x58] sm:$0xff]  ;;  %v3283_v16 = vld [vmem:[%s3858_s13 + $0x10] sm:$0xff]  ;;  %v3288_v17 = vld [vmem:[%s3858_s13 + $0x40] sm:$0xff] }
  0x62   : > { %2292 = vmatpush.msra.mxu3 %v888_v2  ;;  %2291 = vmatpush.msra.mxu2 %v888_v2  ;;  %v3293_v18 = vld [vmem:[%s3858_s13 + $0x70] sm:$0xff]  ;;  %v3304_v19 = vld [vmem:[%s3858_s13 + $0x18] sm:$0xff]  ;;  %v3309_v20 = vld [vmem:[%s3858_s13 + $0x48] sm:$0xff] }
  0x63   : > { %955 = vmatpush.msra.mxu0 %v887_v3  ;;  %2293 = vmatpush.msra.mxu1 %v887_v3  ;;  %v3314_v21 = vld [vmem:[%s3858_s13 + $0x78] sm:$0xff]  ;;  %v3325_v22 = vld [vmem:[%s3858_s13 + $0x20] sm:$0xff]  ;;  %v870_v24 = vld [vmem:[#allocation6 + $0x8] sm:$0xff] }
  0x64   : > { %2245 = vmatmul.msk.f32.vlgmr.msra.gmra.mxu0 %vm891_vm0, %v3227_v4  ;;  %2251 = vmatmul.msk.f32.vlgmr.msra.gmra.mxu1 %vm891_vm0, %v3232_v5  ;;  %v869_v23 = vld [vmem:[#allocation6] sm:$0xff]  ;;  %v3333_v25 = vld [vmem:[%s3858_s13 + $0x28] sm:$0xff] }
  0x65   : > { %1027 = vmatpush.msrb.mxu1 %v1008_v6  ;;  %2295 = vmatpush.msra.mxu3 %v887_v3  ;;  %v3345_v37 = vld [vmem:[%s3807_s6] ss:$0 sm:$0xff] }
  0x66   : > { %2257 = vmatmul.msk.f32.vlgmr.msra.gmra.mxu3 %vm891_vm0, %v3237_v8  ;;  %2294 = vmatpush.msra.mxu2 %v887_v3  ;;  %v3358_v54 = vld [vmem:[%s3808_s7] ss:$0 sm:$0xff] }
  0x67   : > { %1028 = vmatpush.msrb.mxu1 %v1007_v7  ;;  %2255 = vmatmul.msk.f32.vlgmr.msra.gmra.mxu2 %vm891_vm0, %v3246_v9 }
  0x69   : > { %1029 = vmatpush.msrb.mxu1 %v1006_v10 }
  0x6b   : > { %1030 = vmatpush.msrb.mxu1 %v1005_v11 }
  0x6c   : > { %2246 = vmatmul.msk.f32.gmra.mxu0 %vm891_vm0, %v3255_v12  ;;  %2252 = vmatmul.msk.f32.gmra.mxu1 %vm891_vm0, %v3260_v13 }
  0x6e   : > { %2258 = vmatmul.msk.f32.gmra.mxu3 %vm891_vm0, %v3265_v14 }
  0x6f   : > { %2256 = vmatmul.msk.f32.gmra.mxu2 %vm891_vm0, %v3274_v15 }
  0x74   : > { %2247 = vmatmul.msk.f32.gmra.mxu0 %vm891_vm0, %v3283_v16  ;;  %2253 = vmatmul.msk.f32.gmra.mxu1 %vm891_vm0, %v3288_v17 }
  0x76   : > { %2259 = vmatmul.msk.f32.gmra.mxu3 %vm891_vm0, %v3293_v18 }
  0x7c   : > { %2248 = vmatmul.msk.f32.gmra.mxu0 %vm891_vm0, %v3304_v19  ;;  %2254 = vmatmul.msk.f32.gmra.mxu1 %vm891_vm0, %v3309_v20 }
  0x7e   : > { %2260 = vmatmul.msk.f32.gmra.mxu3 %vm891_vm0, %v3314_v21 }
  0x84   : > { %2249 = vmatmul.msk.f32.gmra.mxu0 %vm891_vm0, %v3325_v22  ;;  %2261 = vmatmul.msk.f32.vlgmr.msrb.gmra.mxu1 %vm891_vm0, %v869_v23 }
  0x8c   : > { %2262 = vmatmul.msk.f32.gmra.mxu1 %vm891_vm0, %v870_v24  ;;  %2250 = vmatmul.msk.f32.gmra.mxu0 %vm891_vm0, %v3333_v25 }
  0xe1   : > { %v957_v26 = vpop.f32.mrf.mxu0  ;;  %v975_v27 = vpop.f32.mrf.mxu1 }
  0xe9   : > { %v960_v28 = vpop.f32.mrf.mxu0  ;;  %v978_v29 = vpop.f32.mrf.mxu1 }
  0xea   : > { %v993_v32 = vpop.f32.mrf.mxu3  ;;  %v987_v36 = vpop.f32.mrf.mxu2 }
  0xf1   : > { %v963_v30 = vpop.f32.mrf.mxu0  ;;  %v981_v31 = vpop.f32.mrf.mxu1 }
  0xf2   : > { %v3340_v35 = vpop.f32.mrf.mxu3 }
  0xf9   : > { %v966_v33 = vpop.f32.mrf.mxu0  ;;  %v3338_v34 = vpop.f32.mrf.mxu1 }
  0xfa   : > { %v999_v51 = vpop.f32.mrf.mxu3 }
 0x101   : > { %v969_v38 = vpop.f32.mrf.mxu0  ;;  %v1032_v39 = vpop.f32.mrf.mxu1 }
 0x102   : > { %v1046_v40 = vadd.f32 %v1032_v39, %v981_v31  ;;  %v1042_v41 = vadd.f32 %v1032_v39, %v969_v38  ;;  %v1038_v42 = vadd.f32 %v1032_v39, %v957_v26  ;;  %v1048_v43 = vadd.f32 %v1032_v39, %v987_v36 }
 0x103   : > { %v1044_v44 = vadd.f32 %v1032_v39, %v975_v27  ;;  %v1040_v48 = vadd.f32 %v1032_v39, %v963_v30  ;;  %v1052_v55 = vadd.f32 %v1032_v39, %v999_v51  ;;  %v1050_v58 = vadd.f32 %v1032_v39, %v993_v32 }
 0x104   : > { %v1066_v45 = vadd.f32 %v3345_v37, %v1046_v40  ;;  %v1062_v46 = vadd.f32 %v3345_v37, %v1042_v41  ;;  %v1058_v47 = vadd.f32 %v3345_v37, %v1038_v42  ;;  %v1068_v49 = vadd.f32 %v3345_v37, %v1048_v43  ;;  %v990_v41 = vpop.f32.mrf.mxu2 }
 0x105   : > { %v1064_v50 = vadd.f32 %v3345_v37, %v1044_v44  ;;  %v1060_v52 = vadd.f32 %v3345_v37, %v1040_v48  ;;  %v1072_v3 = vadd.f32 %v3345_v37, %v1052_v55  ;;  %v1070_v10 = vadd.f32 %v3345_v37, %v1050_v58 }
 0x106   : > { %2477 = vtanh.f32 %v1066_v45 }
 0x107   : > { %2479 = vtanh.f32 %v1062_v46 }
 0x108   : > { %2481 = vtanh.f32 %v1058_v47 }
 0x109   : > { %v3353_v53 = vpop.f32.mrf.mxu1  ;;  %2483 = vtanh.f32 %v1068_v49  ;;  %v972_v63 = vpop.f32.mrf.mxu0 }
 0x10a   : > { %2485 = vtanh.f32 %v1064_v50  ;;  %v1039_v56 = vadd.f32 %v3353_v53, %v960_v28  ;;  %v1043_v24 = vadd.f32 %v3353_v53, %v972_v63  ;;  %v1045_v27 = vadd.f32 %v3353_v53, %v978_v29 }
 0x10b   : > { %2487 = vtanh.f32 %v1060_v52  ;;  %v1041_v31 = vadd.f32 %v3353_v53, %v966_v33  ;;  %v1051_v45 = vadd.f32 %v3353_v53, %v3340_v35  ;;  %v1049_v46 = vadd.f32 %v3353_v53, %v990_v41 }
 0x10c   : > { %v2478_v57 = vpop.eup %2477  ;;  %v1059_v0 = vadd.f32 %v3345_v37, %v1039_v56  ;;  %v1063_v36 = vadd.f32 %v3345_v37, %v1043_v24  ;;  %v1065_v38 = vadd.f32 %v3345_v37, %v1045_v27  ;;  %v1047_v49 = vadd.f32 %v3353_v53, %v3338_v34 }
 0x10d   : > { %v2480_v59 = vpop.eup %2479  ;;  %v1102_v60 = vmul.f32 %v2478_v57, %v3358_v54  ;;  %v1061_v42 = vadd.f32 %v3345_v37, %v1041_v31  ;;  %v1071_v51 = vadd.f32 %v3345_v37, %v1051_v45  ;;  %v1069_v55 = vadd.f32 %v3345_v37, %v1049_v46  ;;  %v1168_v46 = vld [vmem:[%s3859_s5 + $0x50] sm:$0xff] }
 0x10e   : > { %v2482_v61 = vpop.eup %2481  ;;  %v1098_v62 = vmul.f32 %v2480_v59, %v3358_v54  ;;  %2489 = vtanh.f32 %v1059_v0  ;;  %v1067_v58 = vadd.f32 %v3345_v37, %v1047_v49  ;;  %v1002_v59 = vpop.f32.mrf.mxu3 }
 0x10f   : > { %v1134_v1 = vsel %vm891_vm0, %v1102_v60, 0.0  ;;  %v1094_v2 = vmul.f32 %v2482_v61, %v3358_v54  ;;  %v2484_v6 = vpop.eup %2483  ;;  %2491 = vtanh.f32 %v1072_v3  ;;  %v1053_v63 = vadd.f32 %v3353_v53, %v1002_v59  ;;  %v1170_v59 = vld [vmem:[%s3859_s5 + $0x60] sm:$0xff] }
 0x110   : > { %1135 = vadd.xlane.f32.xlu2 %v1134_v1  ;;  %v1122_v7 = vsel %vm891_vm0, %v1098_v62, 0.0  ;;  %v2486_v11 = vpop.eup %2485  ;;  %v1104_v28 = vmul.f32 %v2484_v6, %v3358_v54  ;;  %2493 = vtanh.f32 %v1070_v10 }
 0x111   : > { %1123 = vadd.xlane.f32.xlu1 %v1122_v7  ;;  %v1110_v23 = vsel %vm891_vm0, %v1094_v2, 0.0  ;;  %v2488_v26 = vpop.eup %2487  ;;  %v1100_v30 = vmul.f32 %v2486_v11, %v3358_v54  ;;  %2495 = vtanh.f32 %v1063_v36  ;;  %v1073_v6 = vadd.f32 %v3345_v37, %v1053_v63 }
 0x112   : > { %1111 = vadd.xlane.f32.xlu0 %v1110_v23  ;;  %v1096_v32 = vmul.f32 %v2488_v26, %v3358_v54  ;;  %v1140_v39 = vsel %vm891_vm0, %v1104_v28, 0.0  ;;  %2497 = vtanh.f32 %v1065_v38 }
 0x113   : > { %v1128_v29 = vsel %vm891_vm0, %v1100_v30, 0.0  ;;  %2499 = vtanh.f32 %v1061_v42 }
 0x114   : > { %v2490_v40 = vpop.eup %2489  ;;  %v1116_v44 = vsel %vm891_vm0, %v1096_v32, 0.0  ;;  %2501 = vtanh.f32 %v1071_v51 }
 0x115   : > { %v2492_v43 = vpop.eup %2491  ;;  %v1095_v47 = vmul.f32 %v2490_v40, %v3358_v54  ;;  %2503 = vtanh.f32 %v1069_v55  ;;  %v1158_v40 = vld [vmem:[%s3859_s5] sm:$0xff] }
 0x116   : > { %v2494_v33 = vpop.eup %2493  ;;  %v1108_v48 = vmul.f32 %v2492_v43, %v3358_v54  ;;  %2505 = vtanh.f32 %v1067_v58 }
 0x117   : > { %v1106_v50 = vmul.f32 %v2494_v33, %v3358_v54  ;;  %v2496_v52 = vpop.eup %2495  ;;  %v1113_v56 = vsel %vm891_vm0, %v1095_v47, 0.0  ;;  %2507 = vtanh.f32 %v1073_v6 }
 0x118   : > { %1141 = vadd.xlane.f32.xlu2 %v1140_v39  ;;  %v2498_v35 = vpop.eup %2497  ;;  %v1152_v57 = vsel %vm891_vm0, %v1108_v48, 0.0  ;;  %v1099_v61 = vmul.f32 %v2496_v52, %v3358_v54  ;;  %v1162_v39 = vld [vmem:[%s3859_s5 + $0x20] sm:$0xff] }
 0x119   : > { %1129 = vadd.xlane.f32.xlu1 %v1128_v29  ;;  %v1146_v60 = vsel %vm891_vm0, %v1106_v50, 0.0  ;;  %v2500_v34 = vpop.eup %2499  ;;  %v1101_v62 = vmul.f32 %v2498_v35, %v3358_v54  ;;  %v1164_v29 = vld [vmem:[%s3859_s5 + $0x30] sm:$0xff]  ;;  %v1166_v48 = vld [vmem:[%s3859_s5 + $0x40] sm:$0xff] }
 0x11a   : > { %1117 = vadd.xlane.f32.xlu0 %v1116_v44  ;;  %v1097_v0 = vmul.f32 %v2500_v34, %v3358_v54  ;;  %v1125_v1 = vsel %vm891_vm0, %v1099_v61, 0.0  ;;  %v2502_v3 = vpop.eup %2501 }
 0x11b   : > { %v1131_v2 = vsel %vm891_vm0, %v1101_v62, 0.0  ;;  %v2504_v7 = vpop.eup %2503  ;;  %v1107_v23 = vmul.f32 %v2502_v3, %v3358_v54 }
 0x11c   : > { %v1119_v10 = vsel %vm891_vm0, %v1097_v0, 0.0  ;;  %v2506_v11 = vpop.eup %2505  ;;  %v1105_v53 = vmul.f32 %v2504_v7, %v3358_v54 }
 0x11d   : > { %v1103_v24 = vmul.f32 %v2506_v11, %v3358_v54  ;;  %v1149_v26 = vsel %vm891_vm0, %v1107_v23, 0.0  ;;  %v2508_v28 = vpop.eup %2507 }
 0x11e   : > { %v1143_v27 = vsel %vm891_vm0, %v1105_v53, 0.0  ;;  %v1109_v30 = vmul.f32 %v2508_v28, %v3358_v54  ;;  %v1160_v54 = vld [vmem:[%s3859_s5 + $0x10] sm:$0xff] }
 0x11f   : > { %v1137_v37 = vsel %vm891_vm0, %v1103_v24, 0.0 }
 0x120   : > { %1114 = vadd.xlane.f32.xlu2 %v1113_v56  ;;  %v1155_v31 = vsel %vm891_vm0, %v1109_v30, 0.0 }
 0x121   : > { %1153 = vadd.xlane.f32.xlu1 %v1152_v57  ;;  %v1172_v57 = vld [vmem:[%s3859_s5 + $0x70] sm:$0xff] }
 0x122   : > { %1147 = vadd.xlane.f32.xlu0 %v1146_v60 }
 0x128   : > { %1132 = vadd.xlane.f32.xlu2 %v1131_v2 }
 0x129   : > { %1126 = vadd.xlane.f32.xlu1 %v1125_v1 }
 0x12a   : > { %1120 = vadd.xlane.f32.xlu0 %v1119_v10 }
 0x130   : > { %1150 = vadd.xlane.f32.xlu2 %v1149_v26 }
 0x131   : > { %1144 = vadd.xlane.f32.xlu1 %v1143_v27 }
 0x132   : > { %1138 = vadd.xlane.f32.xlu0 %v1137_v37 }
 0x13a   : > { %1156 = vadd.xlane.f32.xlu0 %v1155_v31 }
 0x183   : > { %v1136_v32 = vpop.xlane.xlu2 %1135 }
 0x184   : > { %v1124_v36 = vpop.xlane.xlu1 %1123  ;;  %v1182_v56 = vadd.f32 %v1166_v48, %v1136_v32  ;;  %v1159_v32 = vld [vmem:[%s3859_s5 + $0x8] sm:$0xff] }
 0x185   : > { %v1112_v38 = vpop.xlane.xlu0 %1111  ;;  %v1178_v42 = vadd.f32 %v1162_v39, %v1124_v36  ;;  %v1163_v36 = vld [vmem:[%s3859_s5 + $0x28] sm:$0xff]  ;;  %v2924_v39 = vmov 0  }
 0x186   : > { %v1174_v43 = vadd.f32 %v1158_v40, %v1112_v38  ;;  %v1197_v0 = vsel %vm1190_vm1, %v1182_v56, -inf  ;;  %v1165_v38 = vld [vmem:[%s3859_s5 + $0x38] sm:$0xff]  ;;  %2468 = vset.pattern.permute.xlu0 %v2924_v39  ;;  %2467 = vset.pattern.permute.xlu2 %v2924_v39 }
 0x187   : > { %v1193_v50 = vsel %vm1190_vm1, %v1178_v42, -inf  ;;  %2466 = vset.pattern.permute.xlu1 %v2924_v39 }
 0x188   : > { %v1191_v51 = vsel %vm1190_vm1, %v1174_v43, -inf }
 0x189   : > { %v1194_v58 = vmax.f32 %v1191_v51, %v1193_v50  ;;  %v1169_v50 = vld [vmem:[%s3859_s5 + $0x58] sm:$0xff] }
 0x18b   : > { %v1142_v41 = vpop.xlane.xlu2 %1141  ;;  %v1198_v6 = vmax.f32 %v1194_v58, %v1197_v0 }
 0x18c   : > { %v1130_v44 = vpop.xlane.xlu1 %1129  ;;  %v1184_v55 = vadd.f32 %v1168_v46, %v1142_v41 }
 0x18d   : > { %v1180_v33 = vadd.f32 %v1164_v29, %v1130_v44  ;;  %v1118_v45 = vpop.xlane.xlu0 %1117  ;;  %v1167_v44 = vld [vmem:[%s3859_s5 + $0x48] sm:$0xff] }
 0x18e   : > { %v1176_v47 = vadd.f32 %v1160_v54, %v1118_v45  ;;  %v1199_v34 = vsel %vm1190_vm1, %v1184_v55, -inf }
 0x18f   : > { %v1195_v49 = vsel %vm1190_vm1, %v1180_v33, -inf }
 0x190   : > { %v1192_v52 = vsel %vm1190_vm1, %v1176_v47, -inf }
 0x191   : > { %v1196_v35 = vmax.f32 %v1192_v52, %v1195_v49 }
 0x193   : > { %v1115_v63 = vpop.xlane.xlu2 %1114  ;;  %v1200_v1 = vmax.f32 %v1196_v35, %v1199_v34 }
 0x194   : > { %v1154_v60 = vpop.xlane.xlu1 %1153  ;;  %v3461_v48 = vadd.f32 %v1159_v32, %v1115_v63  ;;  %v1171_v63 = vld [vmem:[%s3859_s5 + $0x68] sm:$0xff] }
 0x195   : > { %v1188_v61 = vadd.f32 %v1172_v57, %v1154_v60  ;;  %v1148_v62 = vpop.xlane.xlu0 %1147 }
 0x196   : > { %v1186_v2 = vadd.f32 %v1170_v59, %v1148_v62 }
 0x197   : > { %v1203_v3 = vsel %vm1190_vm1, %v1188_v61, -inf }
 0x198   : > { %v1204_v7 = vmax.f32 %v1200_v1, %v1203_v3  ;;  %v1201_v10 = vsel %vm1190_vm1, %v1186_v2, -inf }
 0x199   : > { %v1202_v11 = vmax.f32 %v1198_v6, %v1201_v10 }
 0x19b   : > { %v1205_v23 = vmax.f32 %v1202_v11, %v1204_v7  ;;  %v1133_v28 = vpop.xlane.xlu2 %1132  ;;  %v1173_v11 = vld [vmem:[%s3859_s5 + $0x78] sm:$0xff] }
 0x19c   : > { %v1127_v53 = vpop.xlane.xlu1 %1126  ;;  %v3463_v49 = vadd.f32 %v1165_v38, %v1133_v28 }
 0x19d   : > { %v1121_v24 = vpop.xlane.xlu0 %1120  ;;  %v1221_v26 = vsub.f32 %v1174_v43, %v1205_v23  ;;  %v1223_v27 = vsub.f32 %v1176_v47, %v1205_v23  ;;  %v1225_v37 = vsub.f32 %v1178_v42, %v1205_v23  ;;  %v1227_v30 = vsub.f32 %v1180_v33, %v1205_v23  ;;  %v1161_v43 = vld [vmem:[%s3859_s5 + $0x18] sm:$0xff] }
 0x19e   : > { %v1229_v31 = vsub.f32 %v1182_v56, %v1205_v23  ;;  %v1231_v29 = vsub.f32 %v1184_v55, %v1205_v23  ;;  %v1233_v33 = vsub.f32 %v1186_v2, %v1205_v23  ;;  %v3459_v45 = vadd.f32 %v1163_v36, %v1127_v53 }
 0x19f   : > { %v1237_v40 = vmul.f32 1.442695, %v1221_v26  ;;  %v1241_v41 = vmul.f32 1.442695, %v1223_v27  ;;  %v1245_v54 = vmul.f32 1.442695, %v1225_v37  ;;  %v1235_v47 = vsub.f32 %v1188_v61, %v1205_v23 }
 0x1a0   : > { %v1249_v42 = vmul.f32 1.442695, %v1227_v30  ;;  %v1253_v46 = vmul.f32 1.442695, %v1229_v31  ;;  %v1177_v55 = vadd.f32 %v1161_v43, %v1121_v24  ;;  %v1257_v35 = vmul.f32 1.442695, %v1231_v29 }
 0x1a1   : > { %2509 = vpow2.f32 %v1237_v40  ;;  %v1261_v57 = vmul.f32 1.442695, %v1233_v33  ;;  %v1208_v58 = vsel %vm1190_vm1, %v3459_v45, -inf  ;;  %v1265_v34 = vmul.f32 1.442695, %v1235_v47 }
 0x1a2   : > { %2511 = vpow2.f32 %v1241_v41  ;;  %v1206_v61 = vsel %vm1190_vm1, %v3461_v48, -inf  ;;  %v1210_v62 = vsel %vm1190_vm1, %v3463_v49, -inf  ;;  %v1207_v2 = vsel %vm1190_vm1, %v1177_v55, -inf }
 0x1a3   : > { %2513 = vpow2.f32 %v1245_v54  ;;  %v1151_v0 = vpop.xlane.xlu2 %1150  ;;  %v1209_v10 = vmax.f32 %v1206_v61, %v1208_v58  ;;  %v1211_v37 = vmax.f32 %v1207_v2, %v1210_v62 }
 0x1a4   : > { %v1145_v51 = vpop.xlane.xlu1 %1144  ;;  %2515 = vpow2.f32 %v1249_v42  ;;  %v1187_v26 = vadd.f32 %v1171_v63, %v1151_v0 }
 0x1a5   : > { %v1139_v52 = vpop.xlane.xlu0 %1138  ;;  %v3472_v59 = vadd.f32 %v1169_v50, %v1145_v51  ;;  %2517 = vpow2.f32 %v1253_v46 }
 0x1a6   : > { %v3468_v56 = vadd.f32 %v1167_v44, %v1139_v52  ;;  %2519 = vpow2.f32 %v1257_v35  ;;  %v1216_v41 = vsel %vm1190_vm1, %v1187_v26, -inf }
 0x1a7   : > { %v3474_v60 = vpop.eup %2509  ;;  %2521 = vpow2.f32 %v1261_v57  ;;  %v1214_v24 = vsel %vm1190_vm1, %v3472_v59, -inf }
 0x1a8   : > { %v3483_v1 = vpop.eup %2511  ;;  %v1212_v3 = vsel %vm1190_vm1, %v3468_v56, -inf  ;;  %v1269_v6 = vsel %vm1190_vm1, %v3474_v60, 0.0  ;;  %2523 = vpow2.f32 %v1265_v34  ;;  %v1215_v39 = vmax.f32 %v1211_v37, %v1214_v24 }
 0x1a9   : > { %v3490_v7 = vpop.eup %2513  ;;  %v1270_v23 = vsel %vm1190_vm1, %v3483_v1, 0.0  ;;  %v1213_v28 = vmax.f32 %v1209_v10, %v1212_v3 }
 0x1aa   : > { %v3497_v53 = vpop.eup %2515  ;;  %v1271_v27 = vadd.f32 %v1270_v23, %v1269_v6  ;;  %v1272_v31 = vsel %vm1190_vm1, %v3490_v7, 0.0 }
 0x1ab   : > { %v3503_v32 = vpop.eup %2517  ;;  %v1274_v40 = vsel %vm1190_vm1, %v3497_v53, 0.0  ;;  %v1217_v43 = vmax.f32 %v1213_v28, %v1216_v41 }
 0x1ac   : > { %v1273_v38 = vadd.f32 %v1272_v31, %v1271_v27  ;;  %v3507_v29 = vpop.eup %2519  ;;  %v1276_v33 = vsel %vm1190_vm1, %v3503_v32, 0.0 }
 0x1ad   : > { %v1157_v30 = vpop.xlane.xlu0 %1156  ;;  %v3513_v46 = vpop.eup %2521  ;;  %v1278_v51 = vsel %vm1190_vm1, %v3507_v29, 0.0 }
 0x1ae   : > { %v1189_v36 = vadd.f32 %v1173_v11, %v1157_v30  ;;  %v1275_v42 = vadd.f32 %v1274_v40, %v1273_v38  ;;  %v3517_v52 = vpop.eup %2523  ;;  %v1280_v57 = vsel %vm1190_vm1, %v3513_v46, 0.0 }
 0x1af   : > { %v1282_v0 = vsel %vm1190_vm1, %v3517_v52, 0.0 }
 0x1b0   : > { %v1218_v54 = vsel %vm1190_vm1, %v1189_v36, -inf  ;;  %v1277_v47 = vadd.f32 %v1276_v33, %v1275_v42 }
 0x1b1   : > { %v1219_v44 = vmax.f32 %v1215_v39, %v1218_v54 }
 0x1b2   : > { %v1279_v35 = vadd.f32 %v1278_v51, %v1277_v47 }
 0x1b3   : > { %v1220_v50 = vmax.f32 %v1217_v43, %v1219_v44 }
 0x1b4   : > { %v1281_v62 = vadd.f32 %v1280_v57, %v1279_v35 }
 0x1b5   : > { %v1222_v58 = vsub.f32 %v3461_v48, %v1220_v50  ;;  %v1224_v34 = vsub.f32 %v1177_v55, %v1220_v50  ;;  %v1226_v61 = vsub.f32 %v3459_v45, %v1220_v50  ;;  %v1228_v63 = vsub.f32 %v3463_v49, %v1220_v50 }
 0x1b6   : > { %v1283_v3 = vadd.f32 %v1282_v0, %v1281_v62  ;;  %v1230_v6 = vsub.f32 %v3468_v56, %v1220_v50  ;;  %v1232_v24 = vsub.f32 %v3472_v59, %v1220_v50  ;;  %v1234_v45 = vsub.f32 %v1187_v26, %v1220_v50 }
 0x1b7   : > { %v1239_v2 = vmul.f32 1.442695, %v1222_v58  ;;  %v1243_v10 = vmul.f32 1.442695, %v1224_v34  ;;  %v1247_v11 = vmul.f32 1.442695, %v1226_v61  ;;  %v1236_v49 = vsub.f32 %v1189_v36, %v1220_v50 }
 0x1b8   : > { %2525 = vrcp.f32 %v1283_v3  ;;  %v1251_v23 = vmul.f32 1.442695, %v1228_v63  ;;  %v1255_v48 = vmul.f32 1.442695, %v1230_v6  ;;  %v1259_v55 = vmul.f32 1.442695, %v1232_v24 }
 0x1b9   : > { %2527 = vpow2.f32 %v1239_v2  ;;  %v1263_v56 = vmul.f32 1.442695, %v1234_v45  ;;  %v1267_v38 = vmul.f32 1.442695, %v1236_v49  ;;  %v1308_v40 = vand.u32 2147483647, %v1283_v3 }
 0x1ba   : > { %2529 = vpow2.f32 %v1243_v10  ;;  %v1310_v41 = vand.u32 2147483648, %v1283_v3  ;;  %vm1304_vm3 = vweird.f32 %v1283_v3 }
 0x1bb   : > { %2531 = vpow2.f32 %v1247_v11  ;;  %vm1309_vm5 = vcmp.eq.f32.partialorder %v1308_v40, 8.507059e+37 }
 0x1bc   : > { %2533 = vpow2.f32 %v1251_v23  ;;  %v1311_v51 = vor.u32 1.1754944e-38, %v1310_v41 }
 0x1bd   : > { %2535 = vpow2.f32 %v1255_v48 }
 0x1be   : > { %v2526_v27 = vpop.eup %2525  ;;  %2537 = vpow2.f32 %v1259_v55 }
 0x1bf   : > { %v3528_v37 = vpop.eup %2527  ;;  %v1300_v28 = vmul.f32 %v2526_v27, %v1283_v3  ;;  %vm1305_vm2 = vweird.f32 %v2526_v27  ;;  %2539 = vpow2.f32 %v1263_v56 }
 0x1c0   : > { %v3530_v30 = vpop.eup %2529  ;;  %v1284_v31 = vsel %vm1190_vm1, %v3528_v37, 0.0  ;;  %2541 = vpow2.f32 %v1267_v38  ;;  %vm1306_vm4 = vmor %vm1304_vm3, %vm1305_vm2  ;;  %vm1447_vm2 = vcmask 1047559   ;;  %vm1555_vm3 = vcmask 130048  }
 0x1c1   : > { %v3534_v59 = vpop.eup %2531  ;;  %v1301_v39 = vsub.f32 1.0, %v1300_v28  ;;  %v1285_v26 = vsel %vm1190_vm1, %v3530_v30, 0.0 }
 0x1c2   : > { %v3538_v36 = vpop.eup %2533  ;;  %v1286_v54 = vadd.f32 %v1285_v26, %v1284_v31  ;;  %v1287_v43 = vsel %vm1190_vm1, %v3534_v59, 0.0 }
 0x1c3   : > { %v1302_v42 = vmul.f32 %v2526_v27, %v1301_v39  ;;  %v2536_v44 = vpop.eup %2535  ;;  %v1289_v50 = vsel %vm1190_vm1, %v3538_v36, 0.0 }
 0x1c4   : > { %v1288_v33 = vadd.f32 %v1287_v43, %v1286_v54  ;;  %v2538_v57 = vpop.eup %2537  ;;  %v1291_v34 = vsel %vm1190_vm1, %v2536_v44, 0.0 }
 0x1c5   : > { %v1303_v47 = vadd.f32 %v2526_v27, %v1302_v42  ;;  %v2540_v63 = vpop.eup %2539  ;;  %v1293_v6 = vsel %vm1190_vm1, %v2538_v57, 0.0 }
 0x1c6   : > { %v1290_v35 = vadd.f32 %v1289_v50, %v1288_v33  ;;  %v2542_v10 = vpop.eup %2541  ;;  %v1295_v23 = vsel %vm1190_vm1, %v2540_v63, 0.0 }
 0x1c7   : > { %v1307_v58 = vsel %vm1306_vm4, %v2526_v27, %v1303_v47  ;;  %v1297_v48 = vsel %vm1190_vm1, %v2542_v10, 0.0  ;;  %vm1445_vm1 = vcmask 1046534   ;;  %vm1558_vm4 = vcmask 392192  }
 0x1c8   : > { %v1312_v61 = vsel %vm1309_vm5, %v1311_v51, %v1307_v58  ;;  %v1292_v62 = vadd.f32 %v1291_v34, %v1290_v35 }
 0x1c9   : > { %v1313_v0 = vmul.f32 %v3474_v60, %v1312_v61  ;;  %v1331_v2 = vmul.f32 %v3490_v7, %v1312_v61  ;;  %v1329_v3 = vmul.f32 %v3483_v1, %v1312_v61  ;;  %v1335_v49 = vmul.f32 %v3503_v32, %v1312_v61 }
 0x1ca   : > { %v1294_v11 = vadd.f32 %v1293_v6, %v1292_v62  ;;  %v1339_v60 = vmul.f32 %v3513_v46, %v1312_v61  ;;  %v1333_v1 = vmul.f32 %v3497_v53, %v1312_v61  ;;  %v1341_v27 = vmul.f32 %v3517_v52, %v1312_v61 }
 0x1cb   : > { %1360 = vperm.xlu1 %2466, %v1313_v0   ;;  %1372 = vperm.xlu0 %2468, %v1331_v2   ;;  %v1337_v28 = vmul.f32 %v3507_v29, %v1312_v61 }
 0x1cc   : > { %1366 = vperm.xlu2 %2467, %v1329_v3   ;;  %v1296_v24 = vadd.f32 %v1295_v23, %v1294_v11 }
 0x1ce   : > { %v1298_v45 = vadd.f32 %v1297_v48, %v1296_v24 }
 0x1d0   : > { %2543 = vrcp.f32 %v1298_v45  ;;  %v1325_v31 = vand.u32 2147483648, %v1298_v45  ;;  %v1323_v32 = vand.u32 2147483647, %v1298_v45  ;;  %vm1319_vm7 = vweird.f32 %v1298_v45 }
 0x1d2   : > { %v1326_v53 = vor.u32 1.1754944e-38, %v1325_v31  ;;  %vm1324_vm9 = vcmp.eq.f32.partialorder %v1323_v32, 8.507059e+37 }
 0x1d3   : > { %1384 = vperm.xlu1 %2466, %v1335_v49   ;;  %1396 = vperm.xlu0 %2468, %v1339_v60  }
 0x1d4   : > { %1378 = vperm.xlu2 %2467, %v1333_v1  }
 0x1d6   : > { %v2544_v7 = vpop.eup %2543 }
 0x1d7   : > { %v1315_v55 = vmul.f32 %v2544_v7, %v1298_v45  ;;  %vm1320_vm6 = vweird.f32 %v2544_v7 }
 0x1d8   : > { %vm1321_vm8 = vmor %vm1319_vm7, %vm1320_vm6 }
 0x1d9   : > { %v1316_v56 = vsub.f32 1.0, %v1315_v55 }
 0x1db   : > { %1402 = vperm.xlu1 %2466, %v1341_v27   ;;  %v1317_v38 = vmul.f32 %v2544_v7, %v1316_v56 }
 0x1dc   : > { %1390 = vperm.xlu2 %2467, %v1337_v28  }
 0x1dd   : > { %v1318_v46 = vadd.f32 %v2544_v7, %v1317_v38 }
 0x1df   : > { %v1322_v39 = vsel %vm1321_vm8, %v2544_v7, %v1318_v46 }
 0x1e0   : > { %v1327_v26 = vsel %vm1324_vm9, %v1326_v53, %v1322_v39 }
 0x1e1   : > { %v1336_v40 = vmul.f32 %v2536_v44, %v1327_v26  ;;  %v1330_v41 = vmul.f32 %v3530_v30, %v1327_v26  ;;  %v1328_v52 = vmul.f32 %v3528_v37, %v1327_v26  ;;  %v1342_v29 = vmul.f32 %v2542_v10, %v1327_v26 }
 0x1e2   : > { %v1332_v54 = vmul.f32 %v3534_v59, %v1327_v26  ;;  %v1334_v42 = vmul.f32 %v3538_v36, %v1327_v26  ;;  %v1340_v43 = vmul.f32 %v2540_v63, %v1327_v26  ;;  %v1338_v33 = vmul.f32 %v2538_v57, %v1327_v26 }
 0x1e3   : > { %1387 = vperm.xlu0 %2468, %v1336_v40   ;;  %1369 = vperm.xlu1 %2466, %v1330_v41   ;;  %v1407_v30 = vlaneseq }
 0x1e4   : > { %1363 = vperm.xlu2 %2467, %v1328_v52  }
 0x1e5   : > { %v3562_v37 = vand.u32 127, %v1407_v30 }
 0x1e7   : > { %v3566_v59 = vadd.s32 4294967288, %v3562_v37 }
 0x1eb   : > { %1405 = vperm.xlu0 %2468, %v1342_v29   ;;  %1375 = vperm.xlu1 %2466, %v1332_v54  }
 0x1ec   : > { %1381 = vperm.xlu2 %2467, %v1334_v42  }
 0x1f3   : > { %1399 = vperm.xlu1 %2466, %v1340_v43  }
 0x1f4   : > { %1393 = vperm.xlu2 %2467, %v1338_v33  }
 0x226   : > { %v1367_v44 = vpop.permute.xlu2 %1366 }
 0x227   : > { %v1503_v51 = vmul.f32 %v1367_v44, %v3283_v16 }
 0x229   : > { %v1518_v62 = vsel %vm891_vm0, %v1503_v51, 0.0 }
 0x22e   : > { %v1379_v47 = vpop.permute.xlu2 %1378 }
 0x22f   : > { %v1507_v2 = vmul.f32 %v1379_v47, %v3232_v5  ;;  %v1420_v49 = vperm.slane %v1379_v47, %v3562_v37 }
 0x231   : > { %v1522_v11 = vsel %vm891_vm0, %v1507_v2, 0.0 }
 0x236   : > { %v3560_v50 = vpop.permute.xlu2 %1390 }
 0x23d   : > { %v1361_v36 = vpop.permute.xlu1 %1360  ;;  %v3568_v35 = vpop.permute.xlu0 %1372 }
 0x23e   : > { %v1409_v58 = vperm.slane %v1361_v36, %v3562_v37  ;;  %v1501_v57 = vmul.f32 %v1361_v36, %v3227_v4  ;;  %v1505_v34 = vmul.f32 %v3568_v35, %v3325_v22  ;;  %v1364_v61 = vpop.permute.xlu2 %1363  ;;  %v1511_v22 = vmul.f32 %v3560_v50, %v3246_v9 }
 0x23f   : > { %v1411_v16 = vperm.slane %v1364_v61, %v3566_v59  ;;  %v1502_v54 = vmul.f32 %v1364_v61, %v3255_v12  ;;  %v1417_v33 = vperm.slane %v3568_v35, %v3562_v37 }
 0x240   : > { %v1517_v63 = vsel %vm891_vm0, %v1501_v57, 0.0  ;;  %v1520_v3 = vsel %vm891_vm0, %v1505_v34, 0.0  ;;  %v1526_v7 = vsel %vm891_vm0, %v1511_v22, 0.0  ;;  %v1426_v34 = vperm.slane %v3560_v50, %v3562_v37 }
 0x241   : > { %v1519_v0 = vadd.f32 %v1518_v62, %v1517_v63  ;;  %v1413_v6 = vsel %vm1412_vm10, %v1411_v16, %v1409_v58  ;;  %v1532_v47 = vsel %vm891_vm0, %v1502_v54, 0.0 }
 0x243   : > { %v1521_v10 = vadd.f32 %v1520_v3, %v1519_v0 }
 0x245   : > { %v1385_v4 = vpop.permute.xlu1 %1384  ;;  %v1523_v24 = vadd.f32 %v1522_v11, %v1521_v10  ;;  %v3584_v48 = vpop.permute.xlu0 %1396 }
 0x246   : > { %v1509_v23 = vmul.f32 %v1385_v4, %v3288_v17  ;;  %v1382_v45 = vpop.permute.xlu2 %1381  ;;  %v1513_v55 = vmul.f32 %v3584_v48, %v3237_v8  ;;  %v1414_v8 = vperm.slane %v1367_v44, %v3562_v37  ;;  %v1423_v39 = vperm.slane %v1385_v4, %v3562_v37 }
 0x247   : > { %v1421_v60 = vperm.slane %v1382_v45, %v3566_v59  ;;  %v1508_v30 = vmul.f32 %v1382_v45, %v3260_v13  ;;  %v1429_v10 = vperm.slane %v3584_v48, %v3562_v37 }
 0x248   : > { %v1524_v5 = vsel %vm891_vm0, %v1509_v23, 0.0  ;;  %v1528_v28 = vsel %vm891_vm0, %v1513_v55, 0.0 }
 0x249   : > { %v1525_v1 = vadd.f32 %v1524_v5, %v1523_v24  ;;  %v1422_v9 = vsel %vm1412_vm10, %v1421_v60, %v1420_v49  ;;  %v1537_v62 = vsel %vm891_vm0, %v1508_v30, 0.0  ;;  %v3663_v30 = vld [vmem:[#allocation6 + $0x8] sm:$0xff] }
 0x24b   : > { %v1527_v27 = vadd.f32 %v1526_v7, %v1525_v1 }
 0x24d   : > { %v3593_v17 = vpop.permute.xlu1 %1402  ;;  %v1529_v31 = vadd.f32 %v1528_v28, %v1527_v27 }
 0x24e   : > { %v1515_v56 = vmul.f32 %v3593_v17, %v3293_v18  ;;  %v1394_v42 = vpop.permute.xlu2 %1393  ;;  %v1432_v45 = vperm.slane %v3593_v17, %v3562_v37  ;;  %v3651_v17 = vld [vmem:[#allocation3 + $0x8] sm:$0xff] }
 0x250   : > { %v1530_v38 = vsel %vm891_vm0, %v1515_v56, 0.0 }
 0x251   : > { %v3599_v32 = vadd.f32 %v1530_v38, %v1529_v31  ;;  %v2926_v38 = vmov 48.0  }
 0x252   : > { %2545 = vrcp.f32 %v2926_v38 }
 0x253   : > { %1549 = vrot.lane.b32.xlu2 %v3599_v32, %s2925_s9 }
 0x255   : > { %v1388_v46 = vpop.permute.xlu0 %1387  ;;  %v1370_v53 = vpop.permute.xlu1 %1369 }
 0x256   : > { %v1424_v26 = vperm.slane %v1388_v46, %v3566_v59  ;;  %v1415_v18 = vperm.slane %v1370_v53, %v3566_v59  ;;  %v1504_v52 = vmul.f32 %v1370_v53, %v3304_v19  ;;  %v1427_v19 = vperm.slane %v1394_v42, %v3566_v59 }
 0x257   : > { %v1510_v12 = vmul.f32 %v1388_v46, %v3309_v20 }
 0x258   : > { %v1425_v40 = vsel %vm1412_vm10, %v1424_v26, %v1423_v39  ;;  %v1416_v41 = vsel %vm1412_vm10, %v1415_v18, %v1414_v8  ;;  %v1533_v43 = vsel %vm891_vm0, %v1504_v52, 0.0  ;;  %v1428_v0 = vsel %vm1412_vm10, %v1427_v19, %v1426_v34  ;;  %v2546_v8 = vpop.eup %2545  ;;  %v1625_v34 = vld [vmem:[#allocation11 + $0x18] sm:$0xff] }
 0x259   : > { %v1436_v29 = vsel %vm1435_vm11, %v1416_v41, %v1413_v6  ;;  %v1534_v58 = vadd.f32 %v1533_v43, %v1532_v47  ;;  %v1539_v3 = vsel %vm891_vm0, %v1510_v12, 0.0  ;;  %v1566_v46 = vmul.f32 48.0, %v2546_v8  ;;  %v1663_v43 = vld [vmem:[#allocation12 + $0x10] sm:$0xff]  ;;  %v3659_v47 = vld [vmem:[#allocation6] sm:$0xff] }
 0x25a   : > { %vm1570_vm5 = vweird.f32 %v2546_v8 }
 0x25b   : > { %v1567_v53 = vsub.f32 1.0, %v1566_v46 }
 0x25d   : > { %v1376_v44 = vpop.permute.xlu1 %1375  ;;  %v1406_v63 = vpop.permute.xlu0 %1405  ;;  %v1568_v39 = vmul.f32 %v2546_v8, %v1567_v53 }
 0x25e   : > { %v1418_v51 = vperm.slane %v1376_v44, %v3566_v59  ;;  %v1506_v36 = vmul.f32 %v1376_v44, %v3333_v25  ;;  %v1512_v25 = vmul.f32 %v1394_v42, %v3274_v15  ;;  %v1433_v50 = vperm.slane %v1406_v63, %v3566_v59  ;;  %v1664_v42 = vld [vmem:[#allocation12 + $0x18] sm:$0xff]  ;;  %v1661_v44 = vld [vmem:[#allocation12] sm:$0xff] }
 0x25f   : > { %v1516_v15 = vmul.f32 %v1406_v63, %v3314_v21  ;;  %v1569_v26 = vadd.f32 %v2546_v8, %v1568_v39  ;;  %1681 = vmatpush.msrb.mxu3 %v1664_v42 }
 0x260   : > { %v1419_v57 = vsel %vm1412_vm10, %v1418_v51, %v1417_v33  ;;  %v1535_v35 = vsel %vm891_vm0, %v1506_v36, 0.0  ;;  %v1541_v22 = vsel %vm891_vm0, %v1512_v25, 0.0  ;;  %v1434_v1 = vsel %vm1412_vm10, %v1433_v50, %v1432_v45  ;;  %v1662_v33 = vld [vmem:[#allocation12 + $0x8] sm:$0xff]  ;;  %v2471_v50 = vld [vmem:[%s3860_s12] ss:$0 sm:$0xff]  ;;  %s3863_s12 = sld [smem:[#allocation34_spill]] }
 0x261   : > { %v1438_v61 = vsel %vm1437_vm12, %v1419_v57, %v1436_v29  ;;  %v1536_v13 = vadd.f32 %v1535_v35, %v1534_v58  ;;  %v1545_v55 = vsel %vm891_vm0, %v1516_v15, 0.0  ;;  %v3655_v18 = vsel %vm1570_vm5, %v2546_v8, %v1569_v26  ;;  %1682 = vmatpush.msrb.mxu3 %v1663_v43  ;;  %v1627_v57 = vld [vmem:[#allocation11 + $0x28] sm:$0xff]  ;;  %v1626_v35 = vld [vmem:[#allocation11 + $0x20] sm:$0xff] }
 0x262   : > { %v1440_v16 = vsel %vm1439_vm13, %v1422_v9, %v1438_v61  ;;  %1648 = vmatpush.msrb.mxu2 %v1627_v57  ;;  %v1624_v61 = vld [vmem:[#allocation11 + $0x10] sm:$0xff]  ;;  %vm1802_vm5 = vcmask 523264  }
 0x263   : > { %v1538_v20 = vadd.f32 %v1537_v62, %v1536_v13  ;;  %v1442_v2 = vsel %vm1441_vm14, %v1425_v40, %v1440_v16  ;;  %1683 = vmatpush.msrb.mxu3 %v1662_v33  ;;  %v1623_v13 = vld [vmem:[#allocation11 + $0x8] sm:$0xff]  ;;  %v1622_v62 = vld [vmem:[#allocation11] sm:$0xff] }
 0x264   : > { %v1444_v6 = vsel %vm1443_vm15, %v1428_v0, %v1442_v2  ;;  %1649 = vmatpush.msrb.mxu2 %v1626_v35 }
 0x265   : > { %v1400_v4 = vpop.permute.xlu1 %1399  ;;  %v1540_v11 = vadd.f32 %v1539_v3, %v1538_v20  ;;  %1684 = vmatpush.msrb.mxu3 %v1661_v44 }
 0x266   : > { %v1430_v23 = vperm.slane %v1400_v4, %v3566_v59  ;;  %v1514_v24 = vmul.f32 %v1400_v4, %v3265_v14  ;;  %v3647_v14 = vld [vmem:[#allocation3] sm:$0xff]  ;;  %2265 = vmatmul.msk.f32.vlgmr.msrb.gmra.mxu3 %vm891_vm0, %v3659_v47  ;;  %1650 = vmatpush.msrb.mxu2 %v1625_v34  ;;  %v2474_v53 = vld [vmem:[%s3863_s12] ss:$0 sm:$0xff]  ;;  %s3865_s12 = sld [smem:[#allocation38_spill]] }
 0x267   : > { %v1542_v49 = vadd.f32 %v1541_v22, %v1540_v11  ;;  %v2472_v22 = vld [vmem:[%s3861_s28] ss:$0 sm:$0xff]  ;;  %s3866_s28 = sld [smem:[#allocation39_spill]] }
 0x268   : > { %v1543_v48 = vsel %vm891_vm0, %v1514_v24, 0.0  ;;  %v1431_v5 = vsel %vm1412_vm10, %v1430_v23, %v1429_v10  ;;  %1651 = vmatpush.msrb.mxu2 %v1624_v61  ;;  %v2473_v24 = vld [vmem:[%s3862_s20] ss:$0 sm:$0xff] }
 0x269   : > { %v1544_v60 = vadd.f32 %v1543_v48, %v1542_v49  ;;  %v1446_v7 = vsel %vm1445_vm1, %v1431_v5, %v1444_v6 }
 0x26a   : > { %v3641_v21 = vsel %vm1447_vm2, %v1434_v1, %v1446_v7  ;;  %1652 = vmatpush.msrb.mxu2 %v1623_v13 }
 0x26b   : > { %v3643_v59 = vadd.f32 %v1545_v55, %v1544_v60 }
 0x26c   : > { %1653 = vmatpush.msrb.mxu2 %v1622_v62 }
 0x26d   : > { %1551 = vrot.lane.b32.xlu1 %v3643_v59, %s2925_s9  ;;  %s2927_s9 = smov 64  }
 0x26e   : > { %2266 = vmatmul.msk.f32.gmra.mxu3 %vm891_vm0, %v3663_v30 }
 0x2ad   : > { %v1550_v37 = vpop.permute.xlu2 %1549 }
 0x2ae   : > { %v1556_v9 = vsel %vm1555_vm3, %v3647_v14, %v1550_v37 }
 0x2af   : > { %v1559_v27 = vsel %vm1558_vm4, %v1556_v9, 0.0 }
 0x2b0   : > { %1560 = vadd.xlane.f32.xlu0 %v1559_v27 }
 0x2df   : > { %v1552_v28 = vpop.permute.xlu1 %1551 }
 0x2e0   : > { %v1557_v56 = vsel %vm1555_vm3, %v3651_v17, %v1552_v28 }
 0x2e1   : > { %v1562_v31 = vsel %vm1558_vm4, %v1557_v56, 0.0 }
 0x2e2   : > { %1563 = vadd.xlane.f32.xlu2 %v1562_v31 }
 0x2e9   : > { %v1686_v45 = vpop.f32.mrf.mxu3 }
 0x2ea   : > { %v1687_v49 = vadd.f32 %v2473_v24, %v1686_v45 }
 0x2ec   : > { %1734 = vrot.lane.b32.xlu0 %v1687_v49, %s2927_s9 }
 0x2f1   : > { %v1689_v5 = vpop.f32.mrf.mxu3 }
 0x2f2   : > { %v1690_v1 = vadd.f32 %v2473_v24, %v1689_v5 }
 0x323   : > { %v1561_v40 = vpop.xlane.xlu0 %1560 }
 0x324   : > { %v1572_v41 = vmul.f32 %v3655_v18, %v1561_v40 }
 0x326   : > { %v1574_v52 = vsub.f32 %v1556_v9, %v1572_v41 }
 0x328   : > { %v1576_v29 = vmul.f32 %v1574_v52, %v1574_v52 }
 0x32a   : > { %v1578_v54 = vsel %vm1558_vm4, %v1576_v29, 0.0 }
 0x32b   : > { %1579 = vadd.xlane.f32.xlu1 %v1578_v54 }
 0x344   : > { %1736 = vrot.lane.b32.xlu1 %v1690_v1, %s2927_s9 }
 0x355   : > { %v1564_v51 = vpop.xlane.xlu2 %1563 }
 0x356   : > { %v1573_v36 = vmul.f32 %v3655_v18, %v1564_v51 }
 0x358   : > { %v1575_v19 = vsub.f32 %v1557_v56, %v1573_v36 }
 0x35a   : > { %v1577_v58 = vmul.f32 %v1575_v19, %v1575_v19 }
 0x35c   : > { %v1581_v12 = vsel %vm1558_vm4, %v1577_v58, 0.0 }
 0x35d   : > { %1582 = vadd.xlane.f32.xlu2 %v1581_v12 }
 0x39e   : > { %v1580_v25 = vpop.xlane.xlu1 %1579 }
 0x39f   : > { %v1584_v63 = vmul.f32 %v1580_v25, %v3655_v18 }
 0x3a1   : > { %v1586_v16 = vadd.f32 1e-05, %v1584_v63 }
 0x3a3   : > { %2547 = vrsqrt.f32 %v1586_v16  ;;  %vm1594_vm7 = vweird.f32 %v1586_v16 }
 0x3a9   : > { %v2548_v0 = vpop.eup %2547 }
 0x3aa   : > { %v1589_v20 = vmul.f32 %v2548_v0, %v1586_v16  ;;  %vm1595_vm6 = vweird.f32 %v2548_v0 }
 0x3ab   : > { %vm1596_vm8 = vmor %vm1594_vm7, %vm1595_vm6  ;;  %vm1805_vm6 = vcmask 654336  }
 0x3ac   : > { %v1590_v2 = vmul.f32 %v2548_v0, %v1589_v20 }
 0x3ae   : > { %v1591_v3 = vmul.f32 0.5, %v1590_v2 }
 0x3b0   : > { %v1592_v6 = vsub.f32 1.5, %v1591_v3 }
 0x3b2   : > { %v1593_v10 = vmul.f32 %v2548_v0, %v1592_v6 }
 0x3b4   : > { %v1597_v4 = vsel %vm1596_vm8, %v2548_v0, %v1593_v10 }
 0x3b5   : > { %v1608_v11 = vmul.f32 %v1597_v4, %v1574_v52 }
 0x3b7   : > { %v1614_v15 = vmul.f32 %v2471_v50, %v1608_v11 }
 0x3b9   : > { %v1620_v23 = vadd.f32 %v2472_v22, %v1614_v15 }
 0x3bb   : > { %2263 = vmatmul.msk.f32.vlgmr.msrb.gmra.mxu2 %vm1558_vm4, %v1620_v23 }
 0x3d0   : > { %v1583_v48 = vpop.xlane.xlu2 %1582 }
 0x3d1   : > { %v1585_v60 = vmul.f32 %v1583_v48, %v3655_v18 }
 0x3d3   : > { %v1587_v7 = vadd.f32 1e-05, %v1585_v60 }
 0x3d5   : > { %2549 = vrsqrt.f32 %v1587_v7  ;;  %vm1604_vm10 = vweird.f32 %v1587_v7 }
 0x3db   : > { %v2550_v55 = vpop.eup %2549 }
 0x3dc   : > { %v1599_v37 = vmul.f32 %v2550_v55, %v1587_v7  ;;  %vm1605_vm9 = vweird.f32 %v2550_v55 }
 0x3dd   : > { %vm1606_vm11 = vmor %vm1604_vm10, %vm1605_vm9 }
 0x3de   : > { %v1600_v9 = vmul.f32 %v2550_v55, %v1599_v37 }
 0x3e0   : > { %v1601_v27 = vmul.f32 0.5, %v1600_v9 }
 0x3e2   : > { %v1602_v28 = vsub.f32 1.5, %v1601_v27 }
 0x3e4   : > { %v1603_v56 = vmul.f32 %v2550_v55, %v1602_v28 }
 0x3e6   : > { %v1607_v31 = vsel %vm1606_vm11, %v2550_v55, %v1603_v56 }
 0x3e7   : > { %v1609_v38 = vmul.f32 %v1607_v31, %v1575_v19  ;;  %v1735_v19 = vpop.permute.xlu0 %1734 }
 0x3e9   : > { %v1615_v8 = vmul.f32 %v2471_v50, %v1609_v38 }
 0x3eb   : > { %v1621_v46 = vadd.f32 %v2472_v22, %v1615_v8 }
 0x3ed   : > { %2264 = vmatmul.msk.f32.gmra.mxu2 %vm1558_vm4, %v1621_v46 }
 0x43e   : > { %v1655_v39 = vpop.f32.mrf.mxu2 }
 0x43f   : > { %v1656_v26 = vadd.f32 %v2474_v53, %v1655_v39 }
 0x441   : > { %v1692_v18 = vadd.f32 %v1687_v49, %v1656_v26 }
 0x443   : > { %v2267_v40 = vmul.f32 -1.442695, %v1692_v18 }
 0x445   : > { %2551 = vpow2.f32 %v2267_v40  ;;  %v2930_v40 = vmov 80.0  }
 0x44b   : > { %v2552_v41 = vpop.eup %2551 }
 0x44c   : > { %v1700_v52 = vadd.f32 1.0, %v2552_v41 }
 0x44e   : > { %2553 = vrcp.f32 %v1700_v52  ;;  %v1713_v43 = vand.u32 2147483648, %v1700_v52  ;;  %v1711_v44 = vand.u32 2147483647, %v1700_v52  ;;  %vm1707_vm13 = vweird.f32 %v1700_v52 }
 0x450   : > { %v1714_v36 = vor.u32 1.1754944e-38, %v1713_v43  ;;  %vm1712_vm15 = vcmp.eq.f32.partialorder %v1711_v44, 8.507059e+37 }
 0x454   : > { %v2554_v29 = vpop.eup %2553 }
 0x455   : > { %v1703_v54 = vmul.f32 %v2554_v29, %v1700_v52  ;;  %vm1708_vm12 = vweird.f32 %v2554_v29 }
 0x456   : > { %vm1709_vm14 = vmor %vm1707_vm13, %vm1708_vm12 }
 0x457   : > { %v1704_v42 = vsub.f32 1.0, %v1703_v54 }
 0x459   : > { %v1705_v33 = vmul.f32 %v2554_v29, %v1704_v42 }
 0x45b   : > { %v1706_v51 = vadd.f32 %v2554_v29, %v1705_v33 }
 0x45d   : > { %v1710_v58 = vsel %vm1709_vm14, %v2554_v29, %v1706_v51 }
 0x45e   : > { %v1715_v12 = vsel %vm1712_vm15, %v1714_v36, %v1710_v58 }
 0x45f   : > { %v1740_v57 = vmul.f32 %v1735_v19, %v1715_v12  ;;  %v1754_v5 = vsub.f32 1.0, %v1715_v12 }
 0x461   : > { %1744 = vrot.lane.b32.xlu2 %v1740_v57, %s2927_s9 }
 0x469   : > { %1766 = vrot.lane.b32.xlu2 %v3659_v47, %s2928_s30  ;;  %v1737_v47 = vpop.permute.xlu1 %1736 }
 0x470   : > { %v1658_v35 = vpop.f32.mrf.mxu2 }
 0x471   : > { %v1659_v34 = vadd.f32 %v2474_v53, %v1658_v35 }
 0x473   : > { %v1693_v61 = vadd.f32 %v1690_v1, %v1659_v34 }
 0x475   : > { %v2268_v13 = vmul.f32 -1.442695, %v1693_v61 }
 0x477   : > { %2555 = vpow2.f32 %v2268_v13 }
 0x47d   : > { %v2556_v62 = vpop.eup %2555 }
 0x47e   : > { %v1701_v25 = vadd.f32 1.0, %v2556_v62 }
 0x480   : > { %2557 = vrcp.f32 %v1701_v25  ;;  %v1728_v20 = vand.u32 2147483648, %v1701_v25  ;;  %v1726_v3 = vand.u32 2147483647, %v1701_v25  ;;  %vm1722_vm2 = vweird.f32 %v1701_v25 }
 0x482   : > { %v1729_v10 = vor.u32 1.1754944e-38, %v1728_v20  ;;  %vm1727_vm4 = vcmp.eq.f32.partialorder %v1726_v3, 8.507059e+37 }
 0x486   : > { %v2558_v63 = vpop.eup %2557 }
 0x487   : > { %v1718_v16 = vmul.f32 %v2558_v63, %v1701_v25  ;;  %vm1723_vm1 = vweird.f32 %v2558_v63 }
 0x488   : > { %vm1724_vm3 = vmor %vm1722_vm2, %vm1723_vm1 }
 0x489   : > { %v1719_v0 = vsub.f32 1.0, %v1718_v16 }
 0x48b   : > { %v1720_v2 = vmul.f32 %v2558_v63, %v1719_v0 }
 0x48d   : > { %v1721_v6 = vadd.f32 %v2558_v63, %v1720_v2 }
 0x48f   : > { %v1725_v50 = vsel %vm1724_vm3, %v2558_v63, %v1721_v6 }
 0x490   : > { %v1730_v4 = vsel %vm1727_vm4, %v1729_v10, %v1725_v50 }
 0x491   : > { %v1741_v11 = vmul.f32 %v1737_v47, %v1730_v4 }
 0x493   : > { %1746 = vrot.lane.b32.xlu0 %v1741_v11, %s2927_s9  ;;  %v2475_v11 = vld [vmem:[%s3865_s12] ss:$0 sm:$0xff] }
 0x4bb   : > { %v1745_v22 = vpop.permute.xlu2 %1744 }
 0x4bc   : > { %v1750_v15 = vadd.f32 %v1745_v22, %v1656_v26 }
 0x4be   : > { %2559 = vtanh.f32 %v1750_v15 }
 0x4c3   : > { %v1767_v48 = vpop.permute.xlu2 %1766 }
 0x4c4   : > { %v2560_v23 = vpop.eup %2559  ;;  %v1772_v1 = vmul.f32 %v1767_v48, %v1715_v12 }
 0x4c5   : > { %1758 = vrot.lane.b32.xlu1 %v2560_v23, %s2929_s19  ;;  %v2476_v23 = vld [vmem:[%s3866_s28] ss:$0 sm:$0xff] }
 0x4cd   : > { %1768 = vrot.lane.b32.xlu1 %v3663_v30, %s2928_s30 }
 0x4d5   : > { %1786 = vrot.lane.b32.xlu1 %v3599_v32, %s2928_s30  ;;  %v1755_v32 = vsub.f32 1.0, %v1730_v4 }
 0x4dd   : > { %1796 = vrot.lane.b32.xlu1 %v3651_v17, %s2927_s9 }
 0x505   : > { %v1747_v24 = vpop.permute.xlu0 %1746 }
 0x506   : > { %v1751_v45 = vadd.f32 %v1747_v24, %v1659_v34 }
 0x508   : > { %2561 = vtanh.f32 %v1751_v45 }
 0x509   : > { %2563 = vrcp.f32 %v2930_v40 }
 0x50e   : > { %v2562_v49 = vpop.eup %2561 }
 0x50f   : > { %1760 = vrot.lane.b32.xlu0 %v2562_v49, %s2929_s19  ;;  %v2564_v41 = vpop.eup %2563 }
 0x510   : > { %v1813_v52 = vmul.f32 80.0, %v2564_v41  ;;  %vm1817_vm7 = vweird.f32 %v2564_v41 }
 0x512   : > { %v1814_v29 = vsub.f32 1.0, %v1813_v52 }
 0x514   : > { %v1815_v54 = vmul.f32 %v2564_v41, %v1814_v29 }
 0x516   : > { %v1816_v42 = vadd.f32 %v2564_v41, %v1815_v54 }
 0x518   : > { %v1818_v43 = vsel %vm1817_vm7, %v2564_v41, %v1816_v42 }
 0x537   : > { %v1759_v60 = vpop.permute.xlu1 %1758 }
 0x538   : > { %v1764_v7 = vmul.f32 %v1759_v60, %v1754_v5 }
 0x53a   : > { %v1774_v55 = vadd.f32 %v1772_v1, %v1764_v7 }
 0x53c   : > { %1778 = vrot.lane.b32.xlu0 %v1774_v55, %s2929_s19 }
 0x53f   : > { %v1769_v30 = vpop.permute.xlu1 %1768 }
 0x540   : > { %v1773_v9 = vmul.f32 %v1769_v30, %v1730_v4 }
 0x544   : > { %1788 = vrot.lane.b32.xlu0 %v3643_v59, %s2928_s30 }
 0x547   : > { %v1787_v56 = vpop.permute.xlu1 %1786 }
 0x54f   : > { %v1797_v31 = vpop.permute.xlu1 %1796 }
 0x581   : > { %v1761_v37 = vpop.permute.xlu0 %1760 }
 0x582   : > { %v1765_v17 = vmul.f32 %v1761_v37, %v1755_v32 }
 0x584   : > { %v1775_v27 = vadd.f32 %v1773_v9, %v1765_v17 }
 0x586   : > { %1780 = vrot.lane.b32.xlu2 %v1775_v27, %s2929_s19 }
 0x58e   : > { %1794 = vrot.lane.b32.xlu2 %v3647_v14, %s2927_s9 }
 0x5ae   : > { %v1779_v28 = vpop.permute.xlu0 %1778 }
 0x5af   : > { %1784 = vst.msk [vmem:[#allocation16] sm:$0xff] %vm891_vm0, %v1779_v28  ;;  %v1800_v39 = vsel %vm891_vm0, %v1779_v28, %v1787_v56 }
 0x5b6   : > { %v1789_v38 = vpop.permute.xlu0 %1788 }
 0x5e0   : > { %v1781_v8 = vpop.permute.xlu2 %1780 }
 0x5e1   : > { %1785 = vst.msk [vmem:[#allocation16 + $0x8] sm:$0xff] %vm891_vm0, %v1781_v8  ;;  %v1801_v59 = vsel %vm891_vm0, %v1781_v8, %v1789_v38  ;;  %vm1482_vm0 = vcmask 64512  }
 0x5e2   : > { %v1804_v46 = vsel %vm1802_vm5, %v1801_v59, %v1797_v31 }
 0x5e3   : > { %v1809_v53 = vsel %vm1805_vm6, %v1804_v46, 0.0 }
 0x5e4   : > { %1810 = vadd.xlane.f32.xlu2 %v1809_v53 }
 0x5e8   : > { %v1795_v14 = vpop.permute.xlu2 %1794 }
 0x5e9   : > { %v1803_v26 = vsel %vm1802_vm5, %v1800_v39, %v1795_v14 }
 0x5ea   : > { %v1806_v18 = vsel %vm1805_vm6, %v1803_v26, 0.0 }
 0x5eb   : > { %1807 = vadd.xlane.f32.xlu0 %v1806_v18 }
 0x60d   : > { %1450 = vxpose.xlu2.b32.start.end [1/1] (short) (narrow) %v3641_v21, 16 }
 0x657   : > { %v1811_v33 = vpop.xlane.xlu2 %1810 }
 0x658   : > { %v1820_v44 = vmul.f32 %v1818_v43, %v1811_v33 }
 0x65a   : > { %v1822_v51 = vsub.f32 %v1804_v46, %v1820_v44 }
 0x65c   : > { %v1824_v36 = vmul.f32 %v1822_v51, %v1822_v51 }
 0x65e   : > { %v1808_v19 = vpop.xlane.xlu0 %1807  ;;  %v1828_v58 = vsel %vm1805_vm6, %v1824_v36, 0.0 }
 0x65f   : > { %v1819_v12 = vmul.f32 %v1818_v43, %v1808_v19  ;;  %1829 = vadd.xlane.f32.xlu0 %v1828_v58 }
 0x661   : > { %v1821_v57 = vsub.f32 %v1803_v26, %v1819_v12 }
 0x663   : > { %v1823_v21 = vmul.f32 %v1821_v57, %v1821_v57 }
 0x665   : > { %v1825_v35 = vsel %vm1805_vm6, %v1823_v21, 0.0 }
 0x666   : > { %1826 = vadd.xlane.f32.xlu1 %v1825_v35 }
 0x6a6   : > { %v1466_v34 = vpop.trf.xlu2 }
 0x6a7   : > { %1483 = vst.msk [vmem:[%s3864_s4] sm:$0xff] %vm1482_vm0, %v1466_v34 }
 0x6ae   : > { %v1467_v63 = vpop.trf.xlu2 }
 0x6af   : > { %1484 = vst.msk [vmem:[%s3864_s4 + $0x8] sm:$0xff] %vm1482_vm0, %v1467_v63 }
 0x6d2   : > { %v1830_v61 = vpop.xlane.xlu0 %1829 }
 0x6d3   : > { %v1832_v13 = vmul.f32 %v1830_v61, %v1818_v43 }
 0x6d5   : > { %v1834_v62 = vadd.f32 1e-05, %v1832_v13 }
 0x6d7   : > { %2565 = vrsqrt.f32 %v1834_v62  ;;  %vm1851_vm9 = vweird.f32 %v1834_v62 }
 0x6d9   : > { %v1827_v25 = vpop.xlane.xlu1 %1826 }
 0x6da   : > { %v1831_v16 = vmul.f32 %v1827_v25, %v1818_v43 }
 0x6dc   : > { %v1833_v0 = vadd.f32 1e-05, %v1831_v16 }
 0x6dd   : > { %v2566_v20 = vpop.eup %2565 }
 0x6de   : > { %v1846_v2 = vmul.f32 %v2566_v20, %v1834_v62  ;;  %2567 = vrsqrt.f32 %v1833_v0  ;;  %vm1852_vm8 = vweird.f32 %v2566_v20  ;;  %vm1841_vm12 = vweird.f32 %v1833_v0 }
 0x6df   : > { %vm1853_vm10 = vmor %vm1851_vm9, %vm1852_vm8 }
 0x6e0   : > { %v1847_v3 = vmul.f32 %v2566_v20, %v1846_v2 }
 0x6e2   : > { %v1848_v6 = vmul.f32 0.5, %v1847_v3 }
 0x6e4   : > { %v2568_v10 = vpop.eup %2567  ;;  %v1849_v47 = vsub.f32 1.5, %v1848_v6 }
 0x6e5   : > { %v1836_v50 = vmul.f32 %v2568_v10, %v1833_v0  ;;  %vm1842_vm11 = vweird.f32 %v2568_v10 }
 0x6e6   : > { %v1850_v4 = vmul.f32 %v2566_v20, %v1849_v47  ;;  %vm1843_vm13 = vmor %vm1841_vm12, %vm1842_vm11 }
 0x6e7   : > { %v1837_v22 = vmul.f32 %v2568_v10, %v1836_v50 }
 0x6e8   : > { %v1854_v15 = vsel %vm1853_vm10, %v2566_v20, %v1850_v4 }
 0x6e9   : > { %v1856_v24 = vmul.f32 %v1854_v15, %v1822_v51  ;;  %v1838_v45 = vmul.f32 0.5, %v1837_v22 }
 0x6eb   : > { %v1862_v49 = vmul.f32 %v2475_v11, %v1856_v24  ;;  %v1839_v48 = vsub.f32 1.5, %v1838_v45 }
 0x6ed   : > { %v1868_v5 = vadd.f32 %v2476_v23, %v1862_v49  ;;  %v1840_v60 = vmul.f32 %v2568_v10, %v1839_v48 }
 0x6ef   : > { %1870 = vst.msk [vmem:[#allocation2 + $0x8] sm:$0xff] %vm1805_vm6, %v1868_v5  ;;  %v1844_v1 = vsel %vm1843_vm13, %v2568_v10, %v1840_v60 }
 0x6f0   : > { %v1855_v7 = vmul.f32 %v1844_v1, %v1821_v57 }
 0x6f2   : > { %v1861_v55 = vmul.f32 %v2475_v11, %v1855_v7 }
 0x6f4   : > { %v1867_v30 = vadd.f32 %v2476_v23, %v1861_v55 }
 0x6f6   : > { %1869 = vst.msk [vmem:[#allocation2] sm:$0xff] %vm1805_vm6, %v1867_v30 }
 0x6f7 PF: > { %v1891_v32 = vld [vmem:[%s3207_s10 + $0x90] sm:$0xff]  ;;  %v1892_v37 = vld [vmem:[%s3207_s10 + $0x98] sm:$0xff]  ;;  %v1889_v9 = vld [vmem:[%s3207_s10 + $0x80] sm:$0xff]  ;;  %vm1899_vm14 = vcmask 654336   ;;  %s3867_s29 = sld [smem:[#allocation41_spill]]  ;;  %s2932_s12 = smov 128  }
 0x6f8   : > { %2296 = vmatpush.msra.mxu2 %v1891_v32  ;;  %2306 = vmatpush.msra.mxu3 %v1892_v37  ;;  %v1890_v17 = vld [vmem:[%s3207_s10 + $0x88] sm:$0xff]  ;;  %v1887_v27 = vld [vmem:[%s3207_s10 + $0x70] sm:$0xff]  ;;  %v1888_v28 = vld [vmem:[%s3207_s10 + $0x78] sm:$0xff]  ;;  %s2933_s30 = smov 8   ;;  %s2283_s4 = sshll.u32 %s2903_s24, 4 }
 0x6f9   : > { %1912 = vmatpush.msra.mxu0 %v1891_v32  ;;  %1935 = vmatpush.msra.mxu1 %v1892_v37  ;;  %v1885_v56 = vld [vmem:[%s3207_s10 + $0x60] sm:$0xff]  ;;  %v1886_v31 = vld [vmem:[%s3207_s10 + $0x68] sm:$0xff]  ;;  %v1883_v38 = vld [vmem:[%s3207_s10 + $0x50] sm:$0xff]  ;;  %s3868_s9 = sld [smem:[#allocation40_spill]]  ;;  %s1957_s24 = scalar_lea.sflag [#allocation5], %s3204_s8 }
 0x6fa   : > { %2297 = vmatpush.msra.mxu2 %v1889_v9  ;;  %2307 = vmatpush.msra.mxu3 %v1890_v17  ;;  %v1884_v8 = vld [vmem:[%s3207_s10 + $0x58] sm:$0xff]  ;;  %v1881_v59 = vld [vmem:[%s3207_s10 + $0x40] sm:$0xff]  ;;  %v1882_v46 = vld [vmem:[%s3207_s10 + $0x48] sm:$0xff] }
 0x6fb   : > { %1913 = vmatpush.msra.mxu0 %v1889_v9  ;;  %1936 = vmatpush.msra.mxu1 %v1890_v17  ;;  %v1879_v53 = vld [vmem:[%s3207_s10 + $0x30] sm:$0xff]  ;;  %v1880_v39 = vld [vmem:[%s3207_s10 + $0x38] sm:$0xff]  ;;  %v1877_v14 = vld [vmem:[%s3207_s10 + $0x20] sm:$0xff] }
 0x6fc   : > { %2298 = vmatpush.msra.mxu2 %v1887_v27  ;;  %2308 = vmatpush.msra.mxu3 %v1888_v28  ;;  %v1878_v26 = vld [vmem:[%s3207_s10 + $0x28] sm:$0xff]  ;;  %v1875_v18 = vld [vmem:[%s3207_s10 + $0x10] sm:$0xff]  ;;  %v1876_v40 = vld [vmem:[%s3207_s10 + $0x18] sm:$0xff] }
 0x6fd   : > { %1914 = vmatpush.msra.mxu0 %v1887_v27  ;;  %1937 = vmatpush.msra.mxu1 %v1888_v28  ;;  %v1873_v41 = vld [vmem:[%s3207_s10] sm:$0xff]  ;;  %v1874_v52 = vld [vmem:[%s3207_s10 + $0x8] sm:$0xff]  ;;  %s2931_s10 = smov [#allocation16]   ;;  %s1996_s21 = sshll.u32 %s3867_s29, 4  ;;  %s1997_s21 = int_to_ptr.hbm [resolvable:$true] %s1996_s21 }
 0x6fe   : > { %2299 = vmatpush.msra.mxu2 %v1885_v56  ;;  %2309 = vmatpush.msra.mxu3 %v1886_v31  ;;  %v1872_v29 = vld [vmem:[#allocation2 + $0x8] sm:$0xff]  ;;  %v1871_v54 = vld [vmem:[#allocation2] sm:$0xff]  ;;  %s1994_s15 = sshll.u32 %s2931_s10, 4  ;;  %s1995_s15 = int_to_ptr.vmem [resolvable:$true] %s1994_s15 }
 0x6ff   : > { %1915 = vmatpush.msra.mxu0 %v1885_v56  ;;  %1938 = vmatpush.msra.mxu1 %v1886_v31  ;;  %2346 = dma.vmem_to_hbm [thread:$0]  (%p479_p12), %s1995_s15, 256, %s1997_s21, [#allocation17], %s2932_s12, %s2932_s12, %s2933_s30  }
 0x700   : > { %2300 = vmatpush.msra.mxu2 %v1883_v38  ;;  %2310 = vmatpush.msra.mxu3 %v1884_v8  ;;  %v1893_v42 = vld [vmem:[%s852_s26] sm:$0x3]  ;;  %s1976_s29 = scalar_lea.hbm %s3868_s9, %s2283_s4  ;;  %s1977_s15 = sshll.u32 %s3221_s27, 4  ;;  %s1978_s15 = int_to_ptr.vmem [resolvable:$true] %s1977_s15 }
 0x701   : > { %1916 = vmatpush.msra.mxu0 %v1883_v38  ;;  %1939 = vmatpush.msra.mxu1 %v1884_v8  ;;  %v1895_v43 = vperm.slane %v1893_v42, 0  ;;  %v1896_v33 = vperm.slane %v1893_v42, 1  ;;  %s1979_s21 = sshll.u32 %s1976_s29, 4  ;;  %s2829_s30 = scalar_lea.hbm %s3868_s9, 64  ;;  %s1980_s21 = int_to_ptr.hbm [resolvable:$true] %s1979_s21 }
 0x702   : > { %2301 = vmatpush.msra.mxu2 %v1881_v59  ;;  %2311 = vmatpush.msra.mxu3 %v1882_v46  ;;  %s2823_s11 = sshra.s32 %s1980_s21, 4  ;;  %s2824_s11 = int_to_ptr.hbm [resolvable:$true] %s2823_s11 }
 0x703   : > { %1917 = vmatpush.msra.mxu0 %v1881_v59  ;;  %1940 = vmatpush.msra.mxu1 %v1882_v46  ;;  %s2825_s26 = scalar_lea.hbm %s2824_s11, 32  ;;  %p2830_p13 = scmp.lt.s32.totalorder %s2824_s11, %s3868_s9 }
 0x704   : > { %2302 = vmatpush.msra.mxu2 %v1879_v53  ;;  %2312 = vmatpush.msra.mxu3 %v1880_v39  ;;  %p2826_p8 = scmp.ne.s32.totalorder %s2824_s11, %s2825_s26  ;;  %p2831_p0 = scmp.lt.s32.totalorder %s2829_s30, %s2825_s26 }
 0x705   : > { %1918 = vmatpush.msra.mxu0 %v1879_v53  ;;  %1941 = vmatpush.msra.mxu1 %v1880_v39 }
 0x706   : > { %2303 = vmatpush.msra.mxu2 %v1877_v14  ;;  %2313 = vmatpush.msra.mxu3 %v1878_v26  ;;  %p2827_p10 = pnand %p2826_p8, %p3164_p2  ;;  %p2832_p4 = por %p2831_p0, %p2830_p13 }
 0x707   : > { %1919 = vmatpush.msra.mxu0 %v1877_v14  ;;  %1942 = vmatpush.msra.mxu1 %v1878_v26 }
 0x708   : > { %2304 = vmatpush.msra.mxu2 %v1875_v18  ;;  %2314 = vmatpush.msra.mxu3 %v1876_v40  ;;  %p2828_p11 = pneg %p2827_p10 }
 0x709   : > { %1920 = vmatpush.msra.mxu0 %v1875_v18  ;;  %1943 = vmatpush.msra.mxu1 %v1876_v40 }
 0x70a   : > { %2305 = vmatpush.msra.mxu2 %v1873_v41  ;;  %2315 = vmatpush.msra.mxu3 %v1874_v52  ;;  %p2833_p7 = pnand %p2832_p4, %p2828_p11 }
 0x70b   : > { %2270 = vmatmul.msk.f32.vlgmr.msra.gmra.mxu2 %vm1899_vm14, %v1872_v29  ;;  %2272 = vmatmul.msk.f32.vlgmr.msra.gmra.mxu3 %vm1899_vm14, %v1872_v29 }
 0x70c   : > { %1921 = vmatpush.msra.mxu0 %v1873_v41  ;;  %1944 = vmatpush.msra.mxu1 %v1874_v52 }
 0x70d   : > { %2269 = vmatmul.msk.f32.vlgmr.msra.gmra.mxu0 %vm1899_vm14, %v1871_v54  ;;  %2271 = vmatmul.msk.f32.vlgmr.msra.gmra.mxu1 %vm1899_vm14, %v1871_v54 }
 0x78a   : > { %v1923_v44 = vpop.f32.mrf.mxu0  ;;  %v1946_v51 = vpop.f32.mrf.mxu1 }
 0x78b   : > { %v1924_v36 = vadd.f32 %v1923_v44, %v1895_v43  ;;  %v1947_v19 = vadd.f32 %v1946_v51, %v1896_v33 }
 0x78d   : > { %1952 = vst [vmem:[%s3221_s27] sm:$0xff] %v1924_v36 }
 0x78e   : > { %v1926_v58 = vpop.f32.mrf.mxu2  ;;  %1953 = vst [vmem:[%s3221_s27 + $0x8] sm:$0xff] %v1947_v19  ;;  %v1949_v12 = vpop.f32.mrf.mxu3 }
 0x78f   : > { %v1927_v57 = vadd.f32 %v1926_v58, %v1895_v43  ;;  %v1950_v21 = vadd.f32 %v1949_v12, %v1896_v33 }
 0x791   : > { %1954 = vst [vmem:[%s3221_s27 + $0x10] sm:$0xff] %v1927_v57 }
 0x792   : > { %1955 = vst [vmem:[%s3221_s27 + $0x18] sm:$0xff] %v1950_v21 }
 0x793   : > { %2836 = shalt.err (!%p2833_p7)
}
 0x794   : > { %s2934_s8 = smov 256   ;;  %s2935_s27 = smov 512  }
 0x795   : > { %s2936_s10 = smov 16  }
 0x796   : > { %2344 = dma.vmem_to_hbm [thread:$0]  (%p3164_p2), %s1978_s15, 512, %s1980_s21, %s1957_s24, %s2934_s8, %s2935_s27, %s2936_s10  }
 0x797   : > { %2882 = dma.done.wait (%p479_p12), [#allocation17], 256  }
 0x798   : > { %2884 = vsyncadd (%p479_p12), [#allocation17], 4294967040 }
 0x799 PF: > { %s2028_s20 = sand.u32 1, %s2891_s1   ;;  %p2374_p9 = pnand %p2232_p6, %p3171_p5 }
 0x79a   : > { %s2029_s29 = scalar_lea.sflag [#allocation5], %s2028_s20 }
 0x79b   : > { %p2375_p1 = pneg %p2374_p9 }
 0x79d   : > { %2886 = dma.done.wait (%p2375_p1), %s2029_s29, 512  }
 0x79e   : > { %2888 = vsyncadd (%p2375_p1), %s2029_s29, 4294966784  ;;  %s39_s25 = sadd.s32 1, %s2911_s25   ;;  %s3869_s3 = sld [smem:[#allocation25_spill]] }
 0x79f   : > { %p36_p2 = scmp.ge.s32.totalorder %s39_s25, 4   ;;  %s3870_s1 = smov %s2895_s22 }
 0x7a0   : > { %s3871_s22 = smov %s2899_s23  ;;  %s3872_s23 = smov %s3169_s14 }
 0x7a1   : > { %s3873_s24 = smov %s2907_s2  ;;  %38 = sbr.rel (!%p36_p2) target bundleno = 27 (0x1b), region = 196 }
 0x7a4   : > { %s3874_s2 = smov %s3869_s3 }
 0x7a6   :  { %2035 = vsyncpa [#allocation4], 1 }
 0x7a7   :  { %2037 = vsyncpa [#allocation4 + $0x1], 1 }
 0x7a8   :  { %2038 = vsyncpa [#allocation7], 1 }
 0x7a9   :  { %2039 = vsyncpa [#allocation10], 1 }
 0x7aa   :  { %2040 = vsyncpa [#allocation13], 1 }
 0x7ab   :  { %2041 = vsyncpa [#allocation5], 1 }
 0x7ac   :  { %2043 = vsyncpa [#allocation5 + $0x1], 1 }
 0x7ad   :  { %2044 = vsyncpa [#allocation17], 1 }

</bundles_post_ra>
